<compile_context>
chip_gen: v5e
topology: v5e:2x2
jax: 0.10.0
libtpu: 0.0.40
codegen_flags: <defaults>
</compile_context>

<pallas_src>
import jax
import jax.numpy as jnp
from jax.experimental import pallas as pl
from jax.experimental.pallas import tpu as pltpu


# ----------------------------------------------------------------------------
# Hardware-aware sizing helpers
# ----------------------------------------------------------------------------

def _vmem_budget_bytes():
    """Conservative per-call working-set budget (fits v5e/v6e/v7x scoped VMEM)."""
    try:
        info = pltpu.get_tpu_info()
        cap = int(getattr(info, "vmem_capacity_bytes", 64 * 1024 * 1024))
    except Exception:
        cap = 64 * 1024 * 1024
    return min(cap // 4, 24 * 1024 * 1024)


def _num_tensorcores():
    try:
        kind = jax.devices()[0].device_kind.lower()
    except Exception:
        kind = ""
    return 2 if ("v7" in kind or "v4" in kind) else 1


def _pick_batch_block(batch, per_sample_bytes):
    """Largest per-step batch block fitting the VMEM budget (double-buffered);
    only split for megacore on chips that actually have >1 TensorCore."""
    budget = _vmem_budget_bytes()
    bb = min(batch, max(1, budget // max(1, 2 * per_sample_bytes)))
    if _num_tensorcores() > 1 and batch >= 2:
        bb = min(bb, max(1, batch // 2))
    while batch % bb:
        bb -= 1
    return bb, batch // bb


def _compiler_params(semantics, live_block_bytes):
    # double-buffered blocks + headroom, clamped to stay inside every
    # generation's scoped-VMEM ceiling (v7x: 64 MiB physical).
    limit = int(min(max(2 * live_block_bytes + (4 << 20), 16 << 20), 48 << 20))
    return pltpu.CompilerParams(dimension_semantics=semantics,
                                vmem_limit_bytes=limit)


# ----------------------------------------------------------------------------
# Pallas kernels
# ----------------------------------------------------------------------------

def _resample_kernel(w_ref, f_ref, o_ref):
    # w: (bb, T_out, T_in), f: (bb, T_in, D) -> o[b,t,d] = sum_s w[b,t,s]*f[b,s,d]
    # T_in is tiny, so do T_in broadcast-multiply-adds on the lane-dense
    # (T_out, D) block (VPU) instead of a K=T_in matmul (<5% MXU occupancy).
    t_in = f_ref.shape[1]
    w = w_ref[...]
    f = f_ref[...]
    acc = w[:, :, 0:1] * f[:, 0:1, :]
    for s in range(1, t_in):
        acc = acc + w[:, :, s:s + 1] * f[:, s:s + 1, :]
    o_ref[...] = acc


def ttm_resample(feat_tm, wmat):
    """F.grid_sample (bilinear, align_corners=True, zero padding) along T as a
    per-sample weighted sum on time-major features.
    feat_tm: (N, T, D=H*W*C), wmat: (N, T_out, T_in)."""
    N, T, D = feat_tm.shape
    per_sample = 4 * (2 * T * D + T * T)
    bb, g = _pick_batch_block(N, per_sample)
    return pl.pallas_call(
        _resample_kernel,
        out_shape=jax.ShapeDtypeStruct((N, T, D), jnp.float32),
        grid=(g,),
        in_specs=[pl.BlockSpec((bb, T, T), lambda b: (b, 0, 0)),
                  pl.BlockSpec((bb, T, D), lambda b: (b, 0, 0))],
        out_specs=pl.BlockSpec((bb, T, D), lambda b: (b, 0, 0)),
        compiler_params=_compiler_params(("parallel",), bb * per_sample),
    )(wmat, feat_tm)


def _acm_tc_kernel(sm_ref, qm_ref, ws_ref, wq_ref, delta_ref, vsup_ref):
    # Fused ACM temporal-coordinate path on the tiny spatial means only.
    # sm: (n, T, C) support means, qm: (m, T, C) query means,
    # ws = [wk^T | wv^T] (C, 2C), wq = [wq^T | wv^T] (C, 2C).
    n, T, C = sm_ref.shape
    m = qm_ref.shape[0]
    inv_scale = 1.0 / (float(C) ** 0.5)
    mm = (((1,), (0,)), ((), ()))

    # One stacked projection per side (K = C is the only big contraction dim).
    sproj = jax.lax.dot_general(sm_ref[...].reshape(n * T, C), ws_ref[...], mm,
                                preferred_element_type=jnp.float32)      # (n*T, 2C)
    qproj = jax.lax.dot_general(qm_ref[...].reshape(m * T, C), wq_ref[...], mm,
                                preferred_element_type=jnp.float32)      # (m*T, 2C)
    keys = sproj[:, :C]                                                  # (n*T, C)
    vsup_ref[...] = sproj[:, C:].reshape(n, T, C)
    querys = qproj[:, :C]                                                # (m*T, C)
    values = qproj[:, C:].reshape(m, T, C)

    # All scores in one dot (K = C), then softmax over the query-time axis.
    scores = jax.lax.dot_general(querys, keys, (((1,), (1,)), ((), ())),
                                 preferred_element_type=jnp.float32)     # (m*T, n*T)
    scores = jnp.swapaxes(scores.reshape(m, T, n * T), 1, 2) * inv_scale  # (m, n*T, T)
    scores = scores - jnp.max(scores, axis=-1, keepdims=True)
    p = jnp.exp(scores)
    p = p / jnp.sum(p, axis=-1, keepdims=True)      # exact divide (PyTorch parity)

    # Value mix as one batched dot.
    delta = jnp.einsum('mxy,myc->mxc', p, values,
                       preferred_element_type=jnp.float32)               # (m, n*T, C)
    delta_ref[...] = delta.reshape(m, n, T, C)


def acm_temporal_coordinate(s_means, q_means, w_sup, w_qry):
    """Returns (delta (m, n, T, C), vsup (n, T, C))."""
    n, T, C = s_means.shape
    m = q_means.shape[0]
    blk = 4 * (n * T * C + m * T * C + 2 * C * 2 * C + m * n * T * C + n * T * C)
    return pl.pallas_call(
        _acm_tc_kernel,
        out_shape=(jax.ShapeDtypeStruct((m, n, T, C), jnp.float32),
                   jax.ShapeDtypeStruct((n, T, C), jnp.float32)),
        grid=(1,),
        in_specs=[pl.BlockSpec((n, T, C), lambda i: (0, 0, 0)),
                  pl.BlockSpec((m, T, C), lambda i: (0, 0, 0)),
                  pl.BlockSpec((C, 2 * C), lambda i: (0, 0)),
                  pl.BlockSpec((C, 2 * C), lambda i: (0, 0))],
        out_specs=[pl.BlockSpec((m, n, T, C), lambda i: (0, 0, 0, 0)),
                   pl.BlockSpec((n, T, C), lambda i: (0, 0, 0))],
        compiler_params=_compiler_params(("arbitrary",), blk),
    )(s_means, q_means, w_sup, w_qry)


def _pool_kernel(ms_ref, mq_ref, fs_ref, fq_ref, vsup_ref, delta_ref, o_ref):
    fs = fs_ref[0]                          # (T, HW, C)
    fq = fq_ref[0]
    ms = ms_ref[0, 0][:, None, :]           # (T, 1, HW)
    mq = mq_ref[0, 0][:, None, :]
    # Batched over T; the HW contraction streams through the MXU instead of a
    # broadcast-multiply + lane reduce holding a (T, HW, C) temporary.
    ps = jnp.einsum('tqh,thc->tqc', ms, fs,
                    preferred_element_type=jnp.float32)[:, 0, :]         # (T, C)
    pq = jnp.einsum('tqh,thc->tqc', mq, fq,
                    preferred_element_type=jnp.float32)[:, 0, :]
    # Normalized masks sum to 1 over HW, so pooling the raw features and adding
    # vsup / delta here equals pooling (feature + vsup/delta).
    o_ref[0, 0] = jnp.concatenate([ps + vsup_ref[0], pq + delta_ref[0, 0]], axis=-1)


def masked_pair_pool(mask_s, mask_q, support_tm, query_tm, vsup, delta_mn):
    """Mask-weighted spatial pooling for all (support i, query j) pairs.
    Returns pooled (n, m, T, 2C) = [support-pool | query-pool] along channels."""
    n, m, T, HW = mask_s.shape
    C = support_tm.shape[-1]
    blk = 4 * (2 * T * HW + 2 * T * HW * C + 2 * T * C + T * 2 * C)
    return pl.pallas_call(
        _pool_kernel,
        out_shape=jax.ShapeDtypeStruct((n, m, T, 2 * C), jnp.float32),
        grid=(n, m),
        in_specs=[pl.BlockSpec((1, 1, T, HW), lambda i, j: (i, j, 0, 0)),
                  pl.BlockSpec((1, 1, T, HW), lambda i, j: (i, j, 0, 0)),
                  pl.BlockSpec((1, T, HW, C), lambda i, j: (i, 0, 0, 0)),
                  pl.BlockSpec((1, T, HW, C), lambda i, j: (j, 0, 0, 0)),
                  pl.BlockSpec((1, T, C), lambda i, j: (i, 0, 0)),
                  pl.BlockSpec((1, 1, T, C), lambda i, j: (j, i, 0, 0))],
        out_specs=pl.BlockSpec((1, 1, T, 2 * C), lambda i, j: (i, j, 0, 0)),
        compiler_params=_compiler_params(("parallel", "parallel"), blk),
    )(mask_s, mask_q, support_tm, query_tm, vsup, delta_mn)


# ----------------------------------------------------------------------------
# Plain-JAX glue: CNN backbones, mask generation, interpolation weights
# ----------------------------------------------------------------------------

def conv3d(x, w, b=None):
    out = jax.lax.conv_general_dilated(
        x, w, window_strides=(1, 1, 1), padding=[(1, 1)] * 3,
        dimension_numbers=("NCDHW", "OIDHW", "NCDHW"))
    if b is not None:
        out = out + b.reshape(1, -1, 1, 1, 1)
    return out


def batchnorm3d(x, gamma, beta, eps=1e-5):
    # PyTorch-default training-mode batch statistics (biased variance).
    mean = jnp.mean(x, axis=(0, 2, 3, 4), keepdims=True)
    var = jnp.mean((x - mean) ** 2, axis=(0, 2, 3, 4), keepdims=True)
    return (gamma.reshape(1, -1, 1, 1, 1) * (x - mean) * jax.lax.rsqrt(var + eps)
            + beta.reshape(1, -1, 1, 1, 1))


def maxpool3d(x, window):
    dims = (1, 1) + window
    return jax.lax.reduce_window(x, -jnp.inf, jax.lax.max, dims, dims, "VALID")


def locnet_forward(p, x):
    # TTM.locnet: final Linear has zero weight and bias [2, 0] -> constant theta.
    x = conv3d(x, p["conv1_w"], p["conv1_b"])
    x = batchnorm3d(x, p["bn1_g"], p["bn1_b"])
    x = maxpool3d(x, (2, 2, 2))
    x = jax.nn.relu(x)
    x = conv3d(x, p["conv2_w"], p["conv2_b"])
    x = batchnorm3d(x, p["bn2_g"], p["bn2_b"])
    x = maxpool3d(x, (2, 2, 2))
    x = jax.nn.relu(x)
    x = jnp.max(x, axis=(-1, -2, -3))              # AdaptiveMaxPool3d((1,1,1)) + Flatten
    x = x @ p["fc1_w"].T + p["fc1_b"]
    x = jax.nn.relu(x)
    x = x @ p["fc2_w"].T + p["fc2_b"]
    return jnp.tanh(x)                             # (N, 2)


def mvnet_forward(p, x):
    # ACM.mvnet: final Conv1d is zero-initialized -> offsets are exactly 0.
    x = conv3d(x, p["conv1_w"], p["conv1_b"])
    x = batchnorm3d(x, p["bn1_g"], p["bn1_b"])
    x = maxpool3d(x, (1, 2, 2))
    x = jax.nn.relu(x)
    x = conv3d(x, p["conv2_w"], p["conv2_b"])
    x = batchnorm3d(x, p["bn2_g"], p["bn2_b"])
    x = maxpool3d(x, (1, 2, 2))
    x = jax.nn.relu(x)
    x = jnp.max(x, axis=(-1, -2))                  # AdaptiveMaxPool3d((None,1,1)) + Squeeze
    x = jnp.einsum("oc,bct->bot", p["c1d1_w"], x) + p["c1d1_b"][None, :, None]
    x = jax.nn.relu(x)
    x = jnp.einsum("oc,bct->bot", p["c1d2_w"], x) + p["c1d2_b"][None, :, None]
    return jnp.tanh(x)                             # (B, 2, T)


def gen_mask(offsets, L):
    shape = offsets.shape[:-1]
    off = offsets.reshape(-1, 1, 2)
    grid = (jnp.arange(L, dtype=jnp.float32) / (L - 1) * 2.0 - 1.0).reshape(1, L, 1)
    grid = jnp.broadcast_to(grid, (off.shape[0], L, 2)) + off
    full = ((grid > -1.0) & (grid < 1.0)).astype(jnp.float32)
    margin = (1.0 - full) * (1.0 - (jnp.abs(grid) - 1.0) * ((L - 1) / 2.0))
    margin = jnp.maximum(margin, 0.0)
    mask_xy = full + margin
    mask_x, mask_y = mask_xy[..., 0], mask_xy[..., 1]
    mask = mask_y[:, :, None] * mask_x[:, None, :]
    return mask.reshape(*shape, L, L)


def interp_matrix(theta, T):
    """Linear map equivalent to bilinear grid_sample (align_corners=True,
    padding_mode='zeros') along a width-T axis at x(t) = theta0*t + theta1.
    Returns wm (N, T_out, T_in) with out[t] = sum_s wm[t, s] * in[s]."""
    t = jnp.linspace(-1.0, 1.0, T)
    x = theta[:, 0:1] * t[None, :] + theta[:, 1:2]       # (N, T_out)
    ix = (x + 1.0) / 2.0 * (T - 1)
    i0f = jnp.floor(ix)
    w1 = ix - i0f
    w0 = 1.0 - w1
    i0 = i0f.astype(jnp.int32)
    i1 = i0 + 1
    v0 = ((i0 >= 0) & (i0 <= T - 1)).astype(jnp.float32)
    v1 = ((i1 >= 0) & (i1 <= T - 1)).astype(jnp.float32)
    oh0 = jax.nn.one_hot(jnp.clip(i0, 0, T - 1), T, dtype=jnp.float32)
    oh1 = jax.nn.one_hot(jnp.clip(i1, 0, T - 1), T, dtype=jnp.float32)
    return oh0 * (w0 * v0)[..., None] + oh1 * (w1 * v1)[..., None]   # (N, T_out, T_in)


# ----------------------------------------------------------------------------
# TA2N forward (shot == 1)
# ----------------------------------------------------------------------------

def acm_forward(p, support_tm, query_tm, s_means, q_means, H, W):
    # support_tm: (n, T, HW, C), query_tm: (m, T, HW, C)   (time-major, channel-minor)
    n, T, HW, C = support_tm.shape
    m = query_tm.shape[0]
    B = n * m

    wk, wq, wv = p["keynet"], p["querynet"], p["valuenet"]
    w_sup = jnp.concatenate([wk.T, wv.T], axis=1)            # (C, 2C): keys | value(sup)
    w_qry = jnp.concatenate([wq.T, wv.T], axis=1)            # (C, 2C): querys | value(qry)

    # --- temporal coordinate: one fused Pallas kernel on the means ---
    delta_mn, vsup = acm_temporal_coordinate(s_means, q_means, w_sup, w_qry)
    delta = jnp.transpose(delta_mn, (1, 0, 2, 3))            # (n, m, T, C)

    # --- offsets via mvnet (plain-JAX conv backbone; final layer is zero-init) ---
    sp_full = support_tm + vsup[:, :, None, :]                           # (n, T, HW, C)
    qa_full = query_tm[None, :] + delta[:, :, :, None, :]                # (n, m, T, HW, C)
    pairs_in = jnp.concatenate(
        [jnp.broadcast_to(sp_full[:, None], (n, m, T, HW, C)), qa_full], axis=-1)
    pairs_in = jnp.transpose(pairs_in.reshape(B, T, H, W, 2 * C), (0, 4, 1, 2, 3))
    offsets = jnp.transpose(mvnet_forward(p["mvnet"], pairs_in), (0, 2, 1)) * 0.75
    raw_offsets = offsets
    off9 = offsets[:, :, None, :] + p["perturb"]                         # (B, T, 9, 2)

    # --- perturbed sampling masks (plain JAX; tiny) ---
    mask_s = gen_mask(off9, H)
    mask_s = (mask_s / mask_s.sum((-1, -2), keepdims=True)).mean(2)      # (B, T, H, W)
    mask_q = gen_mask(-off9, H)
    mask_q = (mask_q / mask_q.sum((-1, -2), keepdims=True)).mean(2)

    # --- mask-weighted pooling for all pairs: one Pallas kernel over (n, m);
    #     pools the un-broadcast features and adds vsup/delta in-kernel.
    pooled = masked_pair_pool(
        mask_s.reshape(n, m, T, HW), mask_q.reshape(n, m, T, HW),
        support_tm, query_tm, vsup, delta_mn)                            # (n, m, T, 2C)

    pairs = jnp.transpose(pooled, (0, 1, 3, 2))                          # (n, m, 2C, T)
    return pairs[..., None, None], raw_offsets


def ta2n_forward(params, support, query):
    # shot == 1 configuration.
    # TODO(synk): shot > 1 insupport_align / valuenet_multi path is not
    #             exercised (module default shot=1 skips it).
    n, C, T, H, W = support.shape
    m = query.shape[0]
    HW = H * W
    D = HW * C

    original_query = jnp.broadcast_to(query[None], (n, m, C, T, H, W))

    # --- first stage: TTM.align on support and query ---
    # Separate locnet calls (per-call training-mode BN batch statistics),
    # as in the PyTorch module default.
    theta_s = locnet_forward(params["ttm"], support)          # (n, 2)
    theta_q = locnet_forward(params["ttm"], query)            # (m, 2)
    theta = jnp.concatenate([theta_s, theta_q], axis=0)
    wmat = interp_matrix(theta, T)                            # (n+m, T_out, T_in)

    # Time-major, channel-minor layout (N, T, H*W*C): lane-dense Pallas blocks
    # and the HW axis sits exactly where the pooling contraction wants it.
    feat_tm = jnp.concatenate([
        jnp.transpose(support, (0, 2, 3, 4, 1)).reshape(n, T, D),
        jnp.transpose(query, (0, 2, 3, 4, 1)).reshape(m, T, D)], axis=0)
    aligned = ttm_resample(feat_tm, wmat)                     # (n+m, T, D)
    support_tm = aligned[:n].reshape(n, T, HW, C)
    query_tm = aligned[n:].reshape(m, T, HW, C)

    # Spatial means of the aligned features: the mean over HW commutes with the
    # (linear) temporal resample, so resample the tiny raw means instead of
    # reducing the big aligned tensors inside the attention kernel.
    raw_means = jnp.concatenate([jnp.mean(support, axis=(-2, -1)),
                                 jnp.mean(query, axis=(-2, -1))], axis=0)   # (n+m, C, T)
    raw_means = jnp.transpose(raw_means, (0, 2, 1))           # (n+m, T, C)
    means = jnp.einsum('bos,bsc->boc', wmat, raw_means)       # (n+m, T, C)

    prototype_tm = support_tm                                 # shot == 1
    pairs, _raw_offsets = acm_forward(params["acm"], prototype_tm, query_tm,
                                      means[:n], means[n:], H, W)
    return pairs, original_query


# ----------------------------------------------------------------------------
# Deterministic parameter initialization
# ----------------------------------------------------------------------------

def init_params(key, C):
    ks = jax.random.split(key, 10)

    def w(k, shape, scale=0.05):
        return jax.random.normal(k, shape, dtype=jnp.float32) * scale

    ttm = dict(
        conv1_w=w(ks[0], (64, C, 3, 3, 3)), conv1_b=jnp.zeros((64,), jnp.float32),
        bn1_g=jnp.ones((64,), jnp.float32), bn1_b=jnp.zeros((64,), jnp.float32),
        conv2_w=w(ks[1], (128, 64, 3, 3, 3)), conv2_b=jnp.zeros((128,), jnp.float32),
        bn2_g=jnp.ones((128,), jnp.float32), bn2_b=jnp.zeros((128,), jnp.float32),
        fc1_w=w(ks[2], (32, 128)), fc1_b=jnp.zeros((32,), jnp.float32),
        # locnet[-2]: weight zeroed, bias = [2, 0]  (as in TTM.__init__)
        fc2_w=jnp.zeros((2, 32), jnp.float32), fc2_b=jnp.array([2.0, 0.0], jnp.float32),
    )

    mvnet = dict(
        conv1_w=w(ks[3], (128, 2 * C, 3, 3, 3)), conv1_b=jnp.zeros((128,), jnp.float32),
        bn1_g=jnp.ones((128,), jnp.float32), bn1_b=jnp.zeros((128,), jnp.float32),
        conv2_w=w(ks[4], (128, 128, 3, 3, 3)), conv2_b=jnp.zeros((128,), jnp.float32),
        bn2_g=jnp.ones((128,), jnp.float32), bn2_b=jnp.zeros((128,), jnp.float32),
        c1d1_w=w(ks[5], (64, 128)), c1d1_b=jnp.zeros((64,), jnp.float32),
        # mvnet[-2]: weight and bias zeroed  (as in ACM.__init__)
        c1d2_w=jnp.zeros((2, 64), jnp.float32), c1d2_b=jnp.zeros((2,), jnp.float32),
    )

    perturb = (jnp.array([[0, 0], [0, 1], [1, 0], [0, -1], [-1, 0],
                          [1, 1], [-1, -1], [1, -1], [-1, 1]], jnp.float32)
               * 0.2).reshape(1, 1, 9, 2)

    acm = dict(
        keynet=w(ks[6], (C, C)),
        querynet=w(ks[7], (C, C)),
        valuenet=w(ks[8], (C, C)),
        mvnet=mvnet,
        perturb=perturb,
    )
    return {"ttm": ttm, "acm": acm}


# ----------------------------------------------------------------------------
# Main
# ----------------------------------------------------------------------------

if __name__ == "__main__":
    key = jax.random.PRNGKey(0)
    kp, ksup, kqry = jax.random.split(key, 3)

    n, m, shot = 2, 2, 1
    C, T, H, W = 16, 4, 8, 8          # dim=(16,16), T=4 for the small test

    params = init_params(kp, C)
    support = jax.random.normal(ksup, (n * shot, C, T, H, W), dtype=jnp.float32)
    query = jax.random.normal(kqry, (m, C, T, H, W), dtype=jnp.float32)

    fwd = jax.jit(ta2n_forward)
    pairs, original_query = fwd(params, support, query)
    jax.block_until_ready((pairs, original_query))

    assert pairs.shape == (n, m, 2 * C, T, 1, 1), pairs.shape
    assert original_query.shape == (n, m, C, T, H, W), original_query.shape
    assert bool(jnp.all(jnp.isfinite(pairs)))

    print("KERNEL_OK")
</pallas_src>

<mosaic_0001>
module attributes {stable_mosaic.version = 11 : i64} {
  func.func @_resample_kernel(%arg0: i32, %arg1: memref<4x4x4xf32, #tpu.memory_space<vmem>>, %arg2: memref<4x4x1024xf32, #tpu.memory_space<vmem>>, %arg3: memref<4x4x1024xf32, #tpu.memory_space<vmem>>) attributes {dimension_semantics = [#tpu.dimension_semantics<parallel>], iteration_bounds = array<i64: 1>, scalar_prefetch = 0 : i64, scratch_operands = 0 : i64, tpu.core_type = #tpu.core_type<tc>, window_params = [{transform_indices = @transform_0, window_bounds = array<i64: 4, 4, 4>}, {transform_indices = @transform_1, window_bounds = array<i64: 4, 4, 1024>}, {transform_indices = @transform_2, window_bounds = array<i64: 4, 4, 1024>}]} {
    %c0 = arith.constant 0 : index
    %c0_0 = arith.constant 0 : index
    %c0_1 = arith.constant 0 : index
    %0 = vector.load %arg1[%c0, %c0_0, %c0_1] : memref<4x4x4xf32, #tpu.memory_space<vmem>>, vector<4x4x4xf32>
    %c0_2 = arith.constant 0 : index
    %c0_3 = arith.constant 0 : index
    %c0_4 = arith.constant 0 : index
    %1 = vector.load %arg2[%c0_2, %c0_3, %c0_4] : memref<4x4x1024xf32, #tpu.memory_space<vmem>>, vector<4x4x1024xf32>
    %2 = vector.extract_strided_slice %0 {offsets = [0, 0, 0], sizes = [4, 4, 1], strides = [1, 1, 1]} : vector<4x4x4xf32> to vector<4x4x1xf32>
    %3 = vector.extract_strided_slice %1 {offsets = [0, 0, 0], sizes = [4, 1, 1024], strides = [1, 1, 1]} : vector<4x4x1024xf32> to vector<4x1x1024xf32>
    %4 = vector.broadcast %2 : vector<4x4x1xf32> to vector<4x4x1024xf32>
    %5 = vector.broadcast %3 : vector<4x1x1024xf32> to vector<4x4x1024xf32>
    %6 = arith.mulf %4, %5 : vector<4x4x1024xf32>
    %7 = vector.extract_strided_slice %0 {offsets = [0, 0, 1], sizes = [4, 4, 1], strides = [1, 1, 1]} : vector<4x4x4xf32> to vector<4x4x1xf32>
    %8 = vector.extract_strided_slice %1 {offsets = [0, 1, 0], sizes = [4, 1, 1024], strides = [1, 1, 1]} : vector<4x4x1024xf32> to vector<4x1x1024xf32>
    %9 = vector.broadcast %7 : vector<4x4x1xf32> to vector<4x4x1024xf32>
    %10 = vector.broadcast %8 : vector<4x1x1024xf32> to vector<4x4x1024xf32>
    %11 = arith.mulf %9, %10 : vector<4x4x1024xf32>
    %12 = arith.addf %6, %11 : vector<4x4x1024xf32>
    %13 = vector.extract_strided_slice %0 {offsets = [0, 0, 2], sizes = [4, 4, 1], strides = [1, 1, 1]} : vector<4x4x4xf32> to vector<4x4x1xf32>
    %14 = vector.extract_strided_slice %1 {offsets = [0, 2, 0], sizes = [4, 1, 1024], strides = [1, 1, 1]} : vector<4x4x1024xf32> to vector<4x1x1024xf32>
    %15 = vector.broadcast %13 : vector<4x4x1xf32> to vector<4x4x1024xf32>
    %16 = vector.broadcast %14 : vector<4x1x1024xf32> to vector<4x4x1024xf32>
    %17 = arith.mulf %15, %16 : vector<4x4x1024xf32>
    %18 = arith.addf %12, %17 : vector<4x4x1024xf32>
    %19 = vector.extract_strided_slice %0 {offsets = [0, 0, 3], sizes = [4, 4, 1], strides = [1, 1, 1]} : vector<4x4x4xf32> to vector<4x4x1xf32>
    %20 = vector.extract_strided_slice %1 {offsets = [0, 3, 0], sizes = [4, 1, 1024], strides = [1, 1, 1]} : vector<4x4x1024xf32> to vector<4x1x1024xf32>
    %21 = vector.broadcast %19 : vector<4x4x1xf32> to vector<4x4x1024xf32>
    %22 = vector.broadcast %20 : vector<4x1x1024xf32> to vector<4x4x1024xf32>
    %23 = arith.mulf %21, %22 : vector<4x4x1024xf32>
    %24 = arith.addf %18, %23 : vector<4x4x1024xf32>
    %c0_5 = arith.constant 0 : index
    %c0_6 = arith.constant 0 : index
    %c0_7 = arith.constant 0 : index
    %25 = vector.load %arg3[%c0_5, %c0_6, %c0_7] : memref<4x4x1024xf32, #tpu.memory_space<vmem>>, vector<4x4x1024xf32>
    tpu.vector_store %arg3[%c0_5, %c0_6, %c0_7], %24 {strides = array<i32>} : memref<4x4x1024xf32, #tpu.memory_space<vmem>>, vector<4x4x1024xf32>,
    return
  }
  func.func @transform_0(%arg0: i32) -> (i32, i32, i32) {
    %c0_i32 = arith.constant 0 : i32
    %c0_i32_0 = arith.constant 0 : i32
    %c0_i32_1 = arith.constant 0 : i32
    return %arg0, %c0_i32, %c0_i32_0 : i32, i32, i32
  }
  func.func @transform_1(%arg0: i32) -> (i32, i32, i32) {
    %c0_i32 = arith.constant 0 : i32
    %c0_i32_0 = arith.constant 0 : i32
    %c0_i32_1 = arith.constant 0 : i32
    return %arg0, %c0_i32, %c0_i32_0 : i32, i32, i32
  }
  func.func @transform_2(%arg0: i32) -> (i32, i32, i32) {
    %c0_i32 = arith.constant 0 : i32
    %c0_i32_0 = arith.constant 0 : i32
    %c0_i32_1 = arith.constant 0 : i32
    return %arg0, %c0_i32, %c0_i32_0 : i32, i32, i32
  }
}

module attributes {stable_mosaic.version = 11 : i64} {
  func.func @_acm_tc_kernel(%arg0: i32, %arg1: memref<2x4x16xf32, #tpu.memory_space<vmem>>, %arg2: memref<2x4x16xf32, #tpu.memory_space<vmem>>, %arg3: memref<16x32xf32, #tpu.memory_space<vmem>>, %arg4: memref<16x32xf32, #tpu.memory_space<vmem>>, %arg5: memref<2x2x4x16xf32, #tpu.memory_space<vmem>>, %arg6: memref<2x4x16xf32, #tpu.memory_space<vmem>>) attributes {dimension_semantics = [#tpu.dimension_semantics<arbitrary>], iteration_bounds = array<i64: 1>, scalar_prefetch = 0 : i64, scratch_operands = 0 : i64, tpu.core_type = #tpu.core_type<tc>, window_params = [{pipeline_mode = #tpu.pipeline_mode<synchronous>, transform_indices = @transform_0, window_bounds = array<i64: 2, 4, 16>}, {pipeline_mode = #tpu.pipeline_mode<synchronous>, transform_indices = @transform_1, window_bounds = array<i64: 2, 4, 16>}, {pipeline_mode = #tpu.pipeline_mode<synchronous>, transform_indices = @transform_2, window_bounds = array<i64: 16, 32>}, {pipeline_mode = #tpu.pipeline_mode<synchronous>, transform_indices = @transform_3, window_bounds = array<i64: 16, 32>}, {pipeline_mode = #tpu.pipeline_mode<synchronous>, transform_indices = @transform_4, window_bounds = array<i64: 2, 2, 4, 16>}, {pipeline_mode = #tpu.pipeline_mode<synchronous>, transform_indices = @transform_5, window_bounds = array<i64: 2, 4, 16>}]} {
    %c0 = arith.constant 0 : index
    %c0_0 = arith.constant 0 : index
    %c0_1 = arith.constant 0 : index
    %0 = vector.load %arg1[%c0, %c0_0, %c0_1] : memref<2x4x16xf32, #tpu.memory_space<vmem>>, vector<2x4x16xf32>
    %1 = vector.shape_cast %0 : vector<2x4x16xf32> to vector<8x16xf32>
    %c0_2 = arith.constant 0 : index
    %c0_3 = arith.constant 0 : index
    %2 = vector.load %arg3[%c0_2, %c0_3] : memref<16x32xf32, #tpu.memory_space<vmem>>, vector<16x32xf32>
    %cst = arith.constant dense<0.000000e+00> : vector<8x32xf32>
    %3 = tpu.matmul %1, %2, %cst {dimension_numbers = #tpu.dot_dimension_numbers<[1], [0], [0], [1], [0, 0, 1, 1], [], []>} : vector<8x16xf32>, vector<16x32xf32>, vector<8x32xf32> -> vector<8x32xf32>
    %c0_4 = arith.constant 0 : index
    %c0_5 = arith.constant 0 : index
    %c0_6 = arith.constant 0 : index
    %4 = vector.load %arg2[%c0_4, %c0_5, %c0_6] : memref<2x4x16xf32, #tpu.memory_space<vmem>>, vector<2x4x16xf32>
    %5 = vector.shape_cast %4 : vector<2x4x16xf32> to vector<8x16xf32>
    %c0_7 = arith.constant 0 : index
    %c0_8 = arith.constant 0 : index
    %6 = vector.load %arg4[%c0_7, %c0_8] : memref<16x32xf32, #tpu.memory_space<vmem>>, vector<16x32xf32>
    %cst_9 = arith.constant dense<0.000000e+00> : vector<8x32xf32>
    %7 = tpu.matmul %5, %6, %cst_9 {dimension_numbers = #tpu.dot_dimension_numbers<[1], [0], [0], [1], [0, 0, 1, 1], [], []>} : vector<8x16xf32>, vector<16x32xf32>, vector<8x32xf32> -> vector<8x32xf32>
    %8 = vector.extract_strided_slice %3 {offsets = [0, 0], sizes = [8, 16], strides = [1, 1]} : vector<8x32xf32> to vector<8x16xf32>
    %9 = vector.extract_strided_slice %3 {offsets = [0, 16], sizes = [8, 16], strides = [1, 1]} : vector<8x32xf32> to vector<8x16xf32>
    %10 = vector.shape_cast %9 : vector<8x16xf32> to vector<2x4x16xf32>
    %c0_10 = arith.constant 0 : index
    %c0_11 = arith.constant 0 : index
    %c0_12 = arith.constant 0 : index
    %11 = vector.load %arg6[%c0_10, %c0_11, %c0_12] : memref<2x4x16xf32, #tpu.memory_space<vmem>>, vector<2x4x16xf32>
    tpu.vector_store %arg6[%c0_10, %c0_11, %c0_12], %10 {strides = array<i32>} : memref<2x4x16xf32, #tpu.memory_space<vmem>>, vector<2x4x16xf32>,
    %12 = vector.extract_strided_slice %7 {offsets = [0, 0], sizes = [8, 16], strides = [1, 1]} : vector<8x32xf32> to vector<8x16xf32>
    %13 = vector.extract_strided_slice %7 {offsets = [0, 16], sizes = [8, 16], strides = [1, 1]} : vector<8x32xf32> to vector<8x16xf32>
    %14 = vector.shape_cast %13 : vector<8x16xf32> to vector<2x4x16xf32>
    %cst_13 = arith.constant dense<0.000000e+00> : vector<8x8xf32>
    %15 = tpu.matmul %12, %8, %cst_13 {dimension_numbers = #tpu.dot_dimension_numbers<[1], [1], [0], [0], [0, 0, 1, 0], [], []>} : vector<8x16xf32>, vector<8x16xf32>, vector<8x8xf32> -> vector<8x8xf32>
    %16 = vector.shape_cast %15 : vector<8x8xf32> to vector<2x4x8xf32>
    %17 = tpu.transpose %16, [0, 2, 1] : vector<2x4x8xf32> -> vector<2x8x4xf32>
    %cst_14 = arith.constant 2.500000e-01 : f32
    %18 = vector.broadcast %cst_14 : f32 to vector<2x8x4xf32>
    %19 = arith.mulf %17, %18 : vector<2x8x4xf32>
    %cst_15 = arith.constant dense<0xFF800000> : vector<2x8xf32>
    %20 = vector.multi_reduction <maximumf>, %19, %cst_15 [2] : vector<2x8x4xf32> to vector<2x8xf32>
    %21 = vector.shape_cast %20 : vector<2x8xf32> to vector<2x8x1xf32>
    %22 = vector.broadcast %21 : vector<2x8x1xf32> to vector<2x8x4xf32>
    %23 = arith.subf %19, %22 : vector<2x8x4xf32>
    %24 = math.exp %23 : vector<2x8x4xf32>
    %cst_16 = arith.constant dense<0.000000e+00> : vector<2x8xf32>
    %25 = vector.multi_reduction <add>, %24, %cst_16 [2] : vector<2x8x4xf32> to vector<2x8xf32>
    %26 = vector.shape_cast %25 : vector<2x8xf32> to vector<2x8x1xf32>
    %27 = vector.broadcast %26 : vector<2x8x1xf32> to vector<2x8x4xf32>
    %28 = arith.divf %24, %27 : vector<2x8x4xf32>
    "tpu.trace_start"() <{level = 10 : i32, message = "mxy,myc->mxc"}> : () -> ()
    %cst_17 = arith.constant dense<0.000000e+00> : vector<2x8x16xf32>
    %29 = tpu.matmul %28, %14, %cst_17 {dimension_numbers = #tpu.dot_dimension_numbers<[2], [1], [1], [2], [0, 0, 0, 1, 1, 2], [0], [0]>} : vector<2x8x4xf32>, vector<2x4x16xf32>, vector<2x8x16xf32> -> vector<2x8x16xf32>
    "tpu.trace_stop"() : () -> ()
    %30 = vector.shape_cast %29 : vector<2x8x16xf32> to vector<2x2x4x16xf32>
    %c0_18 = arith.constant 0 : index
    %c0_19 = arith.constant 0 : index
    %c0_20 = arith.constant 0 : index
    %c0_21 = arith.constant 0 : index
    %31 = vector.load %arg5[%c0_18, %c0_19, %c0_20, %c0_21] : memref<2x2x4x16xf32, #tpu.memory_space<vmem>>, vector<2x2x4x16xf32>
    tpu.vector_store %arg5[%c0_18, %c0_19, %c0_20, %c0_21], %30 {strides = array<i32>} : memref<2x2x4x16xf32, #tpu.memory_space<vmem>>, vector<2x2x4x16xf32>,
    return
  }
  func.func @transform_0(%arg0: i32) -> (i32, i32, i32) {
    %c0_i32 = arith.constant 0 : i32
    %c0_i32_0 = arith.constant 0 : i32
    %c0_i32_1 = arith.constant 0 : i32
    %c0_i32_2 = arith.constant 0 : i32
    return %c0_i32, %c0_i32_0, %c0_i32_1 : i32, i32, i32
  }
  func.func @transform_1(%arg0: i32) -> (i32, i32, i32) {
    %c0_i32 = arith.constant 0 : i32
    %c0_i32_0 = arith.constant 0 : i32
    %c0_i32_1 = arith.constant 0 : i32
    %c0_i32_2 = arith.constant 0 : i32
    return %c0_i32, %c0_i32_0, %c0_i32_1 : i32, i32, i32
  }
  func.func @transform_2(%arg0: i32) -> (i32, i32) {
    %c0_i32 = arith.constant 0 : i32
    %c0_i32_0 = arith.constant 0 : i32
    %c0_i32_1 = arith.constant 0 : i32
    return %c0_i32, %c0_i32_0 : i32, i32
  }
  func.func @transform_3(%arg0: i32) -> (i32, i32) {
    %c0_i32 = arith.constant 0 : i32
    %c0_i32_0 = arith.constant 0 : i32
    %c0_i32_1 = arith.constant 0 : i32
    return %c0_i32, %c0_i32_0 : i32, i32
  }
  func.func @transform_4(%arg0: i32) -> (i32, i32, i32, i32) {
    %c0_i32 = arith.constant 0 : i32
    %c0_i32_0 = arith.constant 0 : i32
    %c0_i32_1 = arith.constant 0 : i32
    %c0_i32_2 = arith.constant 0 : i32
    %c0_i32_3 = arith.constant 0 : i32
    return %c0_i32, %c0_i32_0, %c0_i32_1, %c0_i32_2 : i32, i32, i32, i32
  }
  func.func @transform_5(%arg0: i32) -> (i32, i32, i32) {
    %c0_i32 = arith.constant 0 : i32
    %c0_i32_0 = arith.constant 0 : i32
    %c0_i32_1 = arith.constant 0 : i32
    %c0_i32_2 = arith.constant 0 : i32
    return %c0_i32, %c0_i32_0, %c0_i32_1 : i32, i32, i32
  }
}

module attributes {stable_mosaic.version = 11 : i64} {
  func.func @_pool_kernel(%arg0: i32, %arg1: i32, %arg2: memref<1x1x4x64xf32, #tpu.memory_space<vmem>>, %arg3: memref<1x1x4x64xf32, #tpu.memory_space<vmem>>, %arg4: memref<1x4x64x16xf32, #tpu.memory_space<vmem>>, %arg5: memref<1x4x64x16xf32, #tpu.memory_space<vmem>>, %arg6: memref<1x4x16xf32, #tpu.memory_space<vmem>>, %arg7: memref<1x1x4x16xf32, #tpu.memory_space<vmem>>, %arg8: memref<1x1x4x32xf32, #tpu.memory_space<vmem>>) attributes {dimension_semantics = [#tpu.dimension_semantics<parallel>, #tpu.dimension_semantics<parallel>], iteration_bounds = array<i64: 2, 2>, scalar_prefetch = 0 : i64, scratch_operands = 0 : i64, tpu.core_type = #tpu.core_type<tc>, window_params = [{transform_indices = @transform_0, window_bounds = array<i64: 1, 1, 4, 64>}, {transform_indices = @transform_1, window_bounds = array<i64: 1, 1, 4, 64>}, {transform_indices = @transform_2, window_bounds = array<i64: 1, 4, 64, 16>}, {transform_indices = @transform_3, window_bounds = array<i64: 1, 4, 64, 16>}, {transform_indices = @transform_4, window_bounds = array<i64: 1, 4, 16>}, {transform_indices = @transform_5, window_bounds = array<i64: 1, 1, 4, 16>}, {transform_indices = @transform_6, window_bounds = array<i64: 1, 1, 4, 32>}]} {
    %c0 = arith.constant 0 : index
    %c0_0 = arith.constant 0 : index
    %c0_1 = arith.constant 0 : index
    %c0_2 = arith.constant 0 : index
    %0 = vector.load %arg4[%c0, %c0_0, %c0_1, %c0_2] : memref<1x4x64x16xf32, #tpu.memory_space<vmem>>, vector<1x4x64x16xf32>
    %1 = vector.shape_cast %0 : vector<1x4x64x16xf32> to vector<4x64x16xf32>
    %c0_3 = arith.constant 0 : index
    %c0_4 = arith.constant 0 : index
    %c0_5 = arith.constant 0 : index
    %c0_6 = arith.constant 0 : index
    %2 = vector.load %arg5[%c0_3, %c0_4, %c0_5, %c0_6] : memref<1x4x64x16xf32, #tpu.memory_space<vmem>>, vector<1x4x64x16xf32>
    %3 = vector.shape_cast %2 : vector<1x4x64x16xf32> to vector<4x64x16xf32>
    %c0_7 = arith.constant 0 : index
    %c0_8 = arith.constant 0 : index
    %c0_9 = arith.constant 0 : index
    %c0_10 = arith.constant 0 : index
    %4 = vector.load %arg2[%c0_7, %c0_8, %c0_9, %c0_10] : memref<1x1x4x64xf32, #tpu.memory_space<vmem>>, vector<1x1x4x64xf32>
    %5 = vector.shape_cast %4 : vector<1x1x4x64xf32> to vector<4x64xf32>
    %6 = vector.shape_cast %5 : vector<4x64xf32> to vector<4x1x64xf32>
    %c0_11 = arith.constant 0 : index
    %c0_12 = arith.constant 0 : index
    %c0_13 = arith.constant 0 : index
    %c0_14 = arith.constant 0 : index
    %7 = vector.load %arg3[%c0_11, %c0_12, %c0_13, %c0_14] : memref<1x1x4x64xf32, #tpu.memory_space<vmem>>, vector<1x1x4x64xf32>
    %8 = vector.shape_cast %7 : vector<1x1x4x64xf32> to vector<4x64xf32>
    %9 = vector.shape_cast %8 : vector<4x64xf32> to vector<4x1x64xf32>
    "tpu.trace_start"() <{level = 10 : i32, message = "tqh,thc->tqc"}> : () -> ()
    %cst = arith.constant dense<0.000000e+00> : vector<4x1x16xf32>
    %10 = tpu.matmul %6, %1, %cst {dimension_numbers = #tpu.dot_dimension_numbers<[2], [1], [1], [2], [0, 0, 0, 1, 1, 2], [0], [0]>} : vector<4x1x64xf32>, vector<4x64x16xf32>, vector<4x1x16xf32> -> vector<4x1x16xf32>
    "tpu.trace_stop"() : () -> ()
    %11 = vector.shape_cast %10 : vector<4x1x16xf32> to vector<4x16xf32>
    "tpu.trace_start"() <{level = 10 : i32, message = "tqh,thc->tqc"}> : () -> ()
    %cst_15 = arith.constant dense<0.000000e+00> : vector<4x1x16xf32>
    %12 = tpu.matmul %9, %3, %cst_15 {dimension_numbers = #tpu.dot_dimension_numbers<[2], [1], [1], [2], [0, 0, 0, 1, 1, 2], [0], [0]>} : vector<4x1x64xf32>, vector<4x64x16xf32>, vector<4x1x16xf32> -> vector<4x1x16xf32>
    "tpu.trace_stop"() : () -> ()
    %13 = vector.shape_cast %12 : vector<4x1x16xf32> to vector<4x16xf32>
    %c0_16 = arith.constant 0 : index
    %c0_17 = arith.constant 0 : index
    %c0_18 = arith.constant 0 : index
    %14 = vector.load %arg6[%c0_16, %c0_17, %c0_18] : memref<1x4x16xf32, #tpu.memory_space<vmem>>, vector<1x4x16xf32>
    %15 = vector.shape_cast %14 : vector<1x4x16xf32> to vector<4x16xf32>
    %16 = arith.addf %11, %15 : vector<4x16xf32>
    %c0_19 = arith.constant 0 : index
    %c0_20 = arith.constant 0 : index
    %c0_21 = arith.constant 0 : index
    %c0_22 = arith.constant 0 : index
    %17 = vector.load %arg7[%c0_19, %c0_20, %c0_21, %c0_22] : memref<1x1x4x16xf32, #tpu.memory_space<vmem>>, vector<1x1x4x16xf32>
    %18 = vector.shape_cast %17 : vector<1x1x4x16xf32> to vector<4x16xf32>
    %19 = arith.addf %13, %18 : vector<4x16xf32>
    %20 = tpu.concatenate %16, %19 in 1 : vector<4x16xf32>, vector<4x16xf32> -> vector<4x32xf32>
    %c0_23 = arith.constant 0 : index
    %c0_24 = arith.constant 0 : index
    %c0_25 = arith.constant 0 : index
    %c0_26 = arith.constant 0 : index
    %21 = vector.load %arg8[%c0_23, %c0_24, %c0_25, %c0_26] : memref<1x1x4x32xf32, #tpu.memory_space<vmem>>, vector<1x1x4x32xf32>
    %22 = vector.shape_cast %21 : vector<1x1x4x32xf32> to vector<4x32xf32>
    %23 = vector.shape_cast %20 : vector<4x32xf32> to vector<1x1x4x32xf32>
    tpu.vector_store %arg8[%c0_23, %c0_24, %c0_25, %c0_26], %23 {strides = array<i32>} : memref<1x1x4x32xf32, #tpu.memory_space<vmem>>, vector<1x1x4x32xf32>,
    return
  }
  func.func @transform_0(%arg0: i32, %arg1: i32) -> (i32, i32, i32, i32) {
    %c0_i32 = arith.constant 0 : i32
    %c0_i32_0 = arith.constant 0 : i32
    %c0_i32_1 = arith.constant 0 : i32
    return %arg0, %arg1, %c0_i32, %c0_i32_0 : i32, i32, i32, i32
  }
  func.func @transform_1(%arg0: i32, %arg1: i32) -> (i32, i32, i32, i32) {
    %c0_i32 = arith.constant 0 : i32
    %c0_i32_0 = arith.constant 0 : i32
    %c0_i32_1 = arith.constant 0 : i32
    return %arg0, %arg1, %c0_i32, %c0_i32_0 : i32, i32, i32, i32
  }
  func.func @transform_2(%arg0: i32, %arg1: i32) -> (i32, i32, i32, i32) {
    %c0_i32 = arith.constant 0 : i32
    %c0_i32_0 = arith.constant 0 : i32
    %c0_i32_1 = arith.constant 0 : i32
    %c0_i32_2 = arith.constant 0 : i32
    return %arg0, %c0_i32, %c0_i32_0, %c0_i32_1 : i32, i32, i32, i32
  }
  func.func @transform_3(%arg0: i32, %arg1: i32) -> (i32, i32, i32, i32) {
    %c0_i32 = arith.constant 0 : i32
    %c0_i32_0 = arith.constant 0 : i32
    %c0_i32_1 = arith.constant 0 : i32
    %c0_i32_2 = arith.constant 0 : i32
    return %arg1, %c0_i32, %c0_i32_0, %c0_i32_1 : i32, i32, i32, i32
  }
  func.func @transform_4(%arg0: i32, %arg1: i32) -> (i32, i32, i32) {
    %c0_i32 = arith.constant 0 : i32
    %c0_i32_0 = arith.constant 0 : i32
    %c0_i32_1 = arith.constant 0 : i32
    return %arg0, %c0_i32, %c0_i32_0 : i32, i32, i32
  }
  func.func @transform_5(%arg0: i32, %arg1: i32) -> (i32, i32, i32, i32) {
    %c0_i32 = arith.constant 0 : i32
    %c0_i32_0 = arith.constant 0 : i32
    %c0_i32_1 = arith.constant 0 : i32
    return %arg1, %arg0, %c0_i32, %c0_i32_0 : i32, i32, i32, i32
  }
  func.func @transform_6(%arg0: i32, %arg1: i32) -> (i32, i32, i32, i32) {
    %c0_i32 = arith.constant 0 : i32
    %c0_i32_0 = arith.constant 0 : i32
    %c0_i32_1 = arith.constant 0 : i32
    return %arg0, %arg1, %c0_i32, %c0_i32_0 : i32, i32, i32, i32
  }
}

</mosaic_0001>

<bundles_post_ra>
// kernel: ta2n_forward.3
= control target key start
LH: loop header
LB: loop body
LE: loop exit
PB: predicated region body
PF: predicated region fallthrough
CT: control target
= control target key end

     0   :  { %v839_v0 = vmov 0   ;;  %v840_v3 = vmov 1   ;;  %v841_v6 = vmov 2   ;;  %v842_v7 = vmov 3   ;;  %s1593_s0 = inlined_call_operand.vmem [shape: f32[4,4,4], index: 0, kind: input, shape index: {}]   ;;  %s1594_s1 = inlined_call_operand.vmem [shape: f32[4,4,1024], index: 1, kind: input, shape index: {}]   ;;  %s1595_s2 = inlined_call_operand.vmem [shape: f32[4,4,1024], index: 2, kind: output, shape index: {}]  }
   0x1   :  { %829 = vset.pattern.permute.xlu1 %v839_v0  ;;  %828 = vset.pattern.permute.xlu0 %v839_v0  ;;  %v13_v1 = vld [vmem:[%s1593_s0 + $0x8] sm:$0xf]  ;;  %v11_v2 = vld [vmem:[%s1593_s0] sm:$0xf]  ;;  %v14_v4 = vld [vmem:[%s1593_s0 + $0xc] sm:$0xf] }
   0x2   :  { %43 = vperm.xlu1 %829, %v13_v1   ;;  %33 = vperm.xlu0 %828, %v11_v2   ;;  %v12_v5 = vld [vmem:[%s1593_s0 + $0x4] sm:$0xf]  ;;  %v878_v9 = vld [vmem:[%s1594_s1 + $0x8] sm:$0xff]  ;;  %v883_v10 = vld [vmem:[%s1594_s1 + $0x10] sm:$0xff]  ;;  %vm771_vm0 = vcmask 1043456  }
   0x3   :  { %830 = vset.pattern.permute.xlu2 %v840_v3  ;;  %v873_v8 = vld [vmem:[%s1594_s1] sm:$0xff]  ;;  %1629 = vst [vmem:[#allocation3_spill] sm:$0xff] %v878_v9  ;;  %v888_v11 = vld [vmem:[%s1594_s1 + $0x18] sm:$0xff]  ;;  %v213_v14 = vperm.slane %v878_v9, 1  ;;  %v901_v16 = vld [vmem:[%s1594_s1 + $0x28] sm:$0xff]  ;;  %v214_v17 = vperm.slane %v878_v9, 5 }
   0x4   :  { %196 = vperm.xlu2 %830, %v11_v2   ;;  %1628 = vst [vmem:[#allocation2_spill] sm:$0xff] %v873_v8  ;;  %v211_v12 = vperm.slane %v873_v8, 1  ;;  %v212_v13 = vperm.slane %v873_v8, 5  ;;  %v896_v15 = vld [vmem:[%s1594_s1 + $0x20] sm:$0xff]  ;;  %v215_v18 = vperm.slane %v883_v10, 1  ;;  %v216_v19 = vperm.slane %v883_v10, 5 }
   0x5   :  { %1630 = vst [vmem:[#allocation4_spill] sm:$0xff] %v883_v10  ;;  %v217_v20 = vperm.slane %v888_v11, 1  ;;  %v910_v21 = vld [vmem:[%s1594_s1 + $0x30] sm:$0xff]  ;;  %v915_v22 = vld [vmem:[%s1594_s1 + $0x38] sm:$0xff]  ;;  %v218_v23 = vperm.slane %v888_v11, 5  ;;  %v922_v26 = vperm.slane %v213_v14, 1 }
   0x6   :  { %1631 = vst [vmem:[#allocation5_spill] sm:$0xff] %v888_v11  ;;  %v918_v24 = vperm.slane %v211_v12, 1  ;;  %v920_v25 = vperm.slane %v212_v13, 1  ;;  %v219_v27 = vperm.slane %v896_v15, 1  ;;  %v220_v28 = vperm.slane %v896_v15, 5  ;;  %v931_v31 = vld [vmem:[%s1594_s1 + $0x40] sm:$0xff] }
   0x7   :  { %1632 = vst [vmem:[#allocation6_spill] sm:$0xff] %v896_v15  ;;  %v221_v29 = vperm.slane %v901_v16, 1  ;;  %v222_v30 = vperm.slane %v901_v16, 5  ;;  %v936_v32 = vld [vmem:[%s1594_s1 + $0x48] sm:$0xff]  ;;  %v223_v33 = vperm.slane %v910_v21, 1  ;;  %v224_v34 = vperm.slane %v910_v21, 5 }
   0x8   :  { %1633 = vst [vmem:[#allocation7_spill] sm:$0xff] %v901_v16  ;;  %v225_v35 = vperm.slane %v915_v22, 1  ;;  %v226_v36 = vperm.slane %v915_v22, 5  ;;  %v942_v37 = vperm.slane %v214_v17, 1  ;;  %v944_v38 = vperm.slane %v215_v18, 1  ;;  %v955_v42 = vld [vmem:[%s1594_s1 + $0x50] sm:$0xff] }
   0x9   :  { %1634 = vst [vmem:[#allocation8_spill] sm:$0xff] %v910_v21  ;;  %v946_v39 = vperm.slane %v216_v19, 1  ;;  %v948_v40 = vperm.slane %v217_v20, 1  ;;  %v950_v41 = vperm.slane %v218_v23, 1  ;;  %v960_v43 = vld [vmem:[%s1594_s1 + $0x58] sm:$0xff]  ;;  %v83_v44 = vperm.slane %v931_v31, 0 }
   0xa   :  { %48 = vperm.xlu1 %829, %v14_v4   ;;  %38 = vperm.xlu0 %828, %v12_v5   ;;  %1635 = vst [vmem:[#allocation9_spill] sm:$0xff] %v915_v22  ;;  %v84_v45 = vperm.slane %v931_v31, 4  ;;  %v85_v46 = vperm.slane %v936_v32, 0  ;;  %v965_v47 = vperm.slane %v219_v27, 1  ;;  %v967_v48 = vperm.slane %v220_v28, 1 }
   0xb   :  { %1636 = vst [vmem:[#allocation10_spill] sm:$0xff] %v931_v31  ;;  %v969_v49 = vperm.slane %v221_v29, 1  ;;  %v971_v50 = vperm.slane %v222_v30, 1  ;;  %v973_v51 = vperm.slane %v223_v33, 1  ;;  %v975_v52 = vperm.slane %v224_v34, 1 }
   0xc   :  { %200 = vperm.xlu2 %830, %v12_v5   ;;  %1637 = vst [vmem:[#allocation11_spill] sm:$0xff] %v936_v32  ;;  %v977_v53 = vperm.slane %v225_v35, 1  ;;  %v979_v54 = vperm.slane %v226_v36, 1  ;;  %v86_v55 = vperm.slane %v936_v32, 4  ;;  %v87_v56 = vperm.slane %v955_v42, 0 }
   0xd   :  { %1638 = vst [vmem:[#allocation12_spill] sm:$0xff] %v955_v42  ;;  %v88_v57 = vperm.slane %v955_v42, 4  ;;  %v89_v58 = vperm.slane %v960_v43, 0  ;;  %v90_v59 = vperm.slane %v960_v43, 4  ;;  %v986_v60 = vperm.slane %v83_v44, 0 }
   0xe   :  { %1639 = vst [vmem:[#allocation13_spill] sm:$0xff] %v960_v43  ;;  %v988_v61 = vperm.slane %v84_v45, 0  ;;  %v990_v62 = vperm.slane %v85_v46, 0  ;;  %v67_v63 = vperm.slane %v873_v8, 0  ;;  %v68_v0 = vperm.slane %v873_v8, 4 }
   0xf   :  { %v1002_v12 = vperm.slane %v87_v56, 0  ;;  %v1004_v13 = vperm.slane %v88_v57, 0  ;;  %v1006_v14 = vperm.slane %v89_v58, 0  ;;  %v1008_v17 = vperm.slane %v90_v59, 0  ;;  %v1043_v59 = vld [vmem:[%s1594_s1 + $0x60] sm:$0xff] }
  0x10   :  { %v1010_v18 = vperm.slane %v67_v63, 0  ;;  %v1012_v19 = vperm.slane %v68_v0, 0  ;;  %v387_v27 = vperm.slane %v873_v8, 2  ;;  %v388_v28 = vperm.slane %v873_v8, 6  ;;  %1647 = vst [vmem:[#allocation21_spill] sm:$0xff] %v1043_v59  ;;  %v1048_v63 = vld [vmem:[%s1594_s1 + $0x68] sm:$0xff] }
  0x11   :  { %1641 = vst [vmem:[#allocation15_spill] sm:$0xff] %v1002_v12  ;;  %v389_v29 = vperm.slane %v878_v9, 2  ;;  %v390_v36 = vperm.slane %v878_v9, 6  ;;  %v391_v44 = vperm.slane %v883_v10, 2  ;;  %v392_v45 = vperm.slane %v883_v10, 6  ;;  %v1053_v0 = vld [vmem:[%s1594_s1 + $0x70] sm:$0xff] }
  0x12   :  { %832 = vset.pattern.permute.xlu1 %v840_v3  ;;  %831 = vset.pattern.permute.xlu0 %v840_v3  ;;  %v71_v3 = vperm.slane %v883_v10, 0  ;;  %1642 = vst [vmem:[#allocation16_spill] sm:$0xff] %v1004_v13  ;;  %v393_v46 = vperm.slane %v888_v11, 2  ;;  %v1034_v56 = vperm.slane %v387_v27, 2  ;;  %v1036_v57 = vperm.slane %v388_v28, 2 }
  0x13   :  { %208 = vperm.xlu1 %832, %v14_v4   ;;  %204 = vperm.xlu0 %831, %v13_v1   ;;  %1643 = vst [vmem:[#allocation17_spill] sm:$0xff] %v1006_v14  ;;  %v1038_v58 = vperm.slane %v389_v29, 2  ;;  %v96_v27 = vperm.slane %v1053_v0, 4 }
  0x14   :  { %833 = vset.pattern.permute.xlu2 %v841_v6  ;;  %1644 = vst [vmem:[#allocation18_spill] sm:$0xff] %v1008_v17  ;;  %v1021_v30 = vperm.slane %v71_v3, 0  ;;  %v92_v3 = vperm.slane %v1043_v59, 4  ;;  %v1074_v8 = vperm.slane %v393_v46, 2 }
  0x15   :  { %372 = vperm.xlu2 %833, %v11_v2   ;;  %1648 = vst [vmem:[#allocation22_spill] sm:$0xff] %v1048_v63 }
  0x16   :  { %1649 = vst [vmem:[#allocation23_spill] sm:$0xff] %v1053_v0  ;;  %v1080_v12 = vperm.slane %v92_v3, 0  ;;  %v75_v3 = vperm.slane %v896_v15, 0 }
  0x1b   :  { %834 = vset.pattern.permute.xlu1 %v841_v6  ;;  %835 = vset.pattern.permute.xlu0 %v841_v6  ;;  %v74_v6 = vperm.slane %v888_v11, 4 }
  0x1c   :  { %376 = vperm.xlu1 %834, %v12_v5   ;;  %384 = vperm.xlu0 %835, %v14_v4  }
  0x1d   :  { %380 = vperm.xlu2 %833, %v13_v1   ;;  %v1027_v35 = vperm.slane %v74_v6, 0  ;;  %v95_v6 = vperm.slane %v1053_v0, 0 }
  0x1f   :  { %1646 = vst [vmem:[#allocation20_spill] sm:$0xff] %v1027_v35 }
  0x24   :  { %836 = vset.pattern.permute.xlu1 %v842_v7  ;;  %838 = vset.pattern.permute.xlu0 %v842_v7 }
  0x25   :  { %548 = vperm.xlu1 %836, %v11_v2   ;;  %837 = vset.pattern.permute.xlu2 %v842_v7  ;;  %v70_v2 = vperm.slane %v878_v9, 4  ;;  %v1000_v7 = vperm.slane %v86_v55, 0  ;;  %v394_v55 = vperm.slane %v888_v11, 6 }
  0x26   :  { %552 = vperm.xlu2 %837, %v12_v5   ;;  %v73_v5 = vperm.slane %v888_v11, 0  ;;  %v1068_v11 = vperm.slane %v390_v36, 2  ;;  %v1088_v36 = vperm.slane %v96_v27, 0  ;;  %v79_v27 = vperm.slane %v910_v21, 0 }
  0x27   :  { %1640 = vst [vmem:[#allocation14_spill] sm:$0xff] %v1000_v7  ;;  %v1016_v23 = vperm.slane %v70_v2, 0  ;;  %v91_v2 = vperm.slane %v1043_v59, 0  ;;  %v1076_v14 = vperm.slane %v394_v55, 2 }
  0x28   :  { %v1025_v34 = vperm.slane %v73_v5, 0  ;;  %v94_v5 = vperm.slane %v1048_v63, 4  ;;  %1653 = vst [vmem:[#allocation27_spill] sm:$0xff] %v1088_v36  ;;  %v1134_v36 = vperm.slane %v79_v27, 0  ;;  %v409_v27 = vperm.slane %v960_v43, 2 }
  0x29   :  { %v1078_v13 = vperm.slane %v91_v2, 0 }
  0x2a   :  { %1645 = vst [vmem:[#allocation19_spill] sm:$0xff] %v1025_v34  ;;  %v1084_v35 = vperm.slane %v94_v5, 0  ;;  %v1086_v34 = vperm.slane %v95_v6, 0  ;;  %v77_v5 = vperm.slane %v901_v16, 0  ;;  %v78_v6 = vperm.slane %v901_v16, 4 }
  0x2c   :  { %1651 = vst [vmem:[#allocation25_spill] sm:$0xff] %v1084_v35  ;;  %v410_v35 = vperm.slane %v960_v43, 6 }
  0x2d   :  { %556 = vperm.xlu1 %836, %v13_v1   ;;  %v69_v1 = vperm.slane %v878_v9, 0  ;;  %v1072_v9 = vperm.slane %v392_v45, 2  ;;  %1652 = vst [vmem:[#allocation26_spill] sm:$0xff] %v1086_v34 }
  0x2e   :  { %560 = vperm.xlu2 %837, %v14_v4   ;;  %v72_v4 = vperm.slane %v883_v10, 4  ;;  %v1070_v10 = vperm.slane %v391_v44, 2 }
  0x2f   :  { %v1014_v20 = vperm.slane %v69_v1, 0  ;;  %v1058_v1 = vld [vmem:[%s1594_s1 + $0x78] sm:$0xff] }
  0x30   :  { %v1023_v33 = vperm.slane %v72_v4, 0  ;;  %1650 = vst [vmem:[#allocation24_spill] sm:$0xff] %v1058_v1  ;;  %v93_v4 = vperm.slane %v1048_v63, 0  ;;  %v97_v28 = vperm.slane %v1058_v1, 0  ;;  %v98_v29 = vperm.slane %v1058_v1, 4 }
  0x32   :  { %v1082_v7 = vperm.slane %v93_v4, 0  ;;  %v1090_v44 = vperm.slane %v97_v28, 0  ;;  %v1101_v2 = vperm.slane %v98_v29, 0  ;;  %v76_v4 = vperm.slane %v896_v15, 4 }
  0x33   :  { %v82_v28 = vperm.slane %v915_v22, 4 }
  0x34   :  { %1654 = vst [vmem:[#allocation28_spill] sm:$0xff] %v1090_v44  ;;  %v1128_v44 = vperm.slane %v76_v4, 0  ;;  %v406_v4 = vperm.slane %v936_v32, 6 }
  0x35   :  { %1655 = vst [vmem:[#allocation29_spill] sm:$0xff] %v1101_v2 }
  0x5e   :  { %v197_v17 = vpop.permute.xlu2 %196 }
  0x5f   :  { %v1093_v45 = vmul.f32 %v918_v24, %v197_v17  ;;  %v1096_v46 = vmul.f32 %v920_v25, %v197_v17  ;;  %v1099_v55 = vmul.f32 %v922_v26, %v197_v17  ;;  %v80_v24 = vperm.slane %v910_v21, 4 }
  0x60   :  { %v81_v25 = vperm.slane %v915_v22, 0  ;;  %v1112_v26 = vmul.f32 %v942_v37, %v197_v17  ;;  %v1115_v29 = vmul.f32 %v944_v38, %v197_v17  ;;  %v1118_v15 = vmul.f32 %v946_v39, %v197_v17 }
  0x61   :  { %v1121_v2 = vmul.f32 %v948_v40, %v197_v17  ;;  %v1124_v16 = vmul.f32 %v950_v41, %v197_v17  ;;  %v1126_v21 = vperm.slane %v75_v3, 0  ;;  %v1130_v22 = vperm.slane %v77_v5, 0 }
  0x62   :  { %v1132_v37 = vperm.slane %v78_v6, 0  ;;  %v1136_v38 = vperm.slane %v80_v24, 0  ;;  %v1138_v39 = vperm.slane %v81_v25, 0  ;;  %v1140_v40 = vperm.slane %v82_v28, 0 }
  0x63   :  { %v403_v41 = vperm.slane %v931_v31, 2  ;;  %v404_v17 = vperm.slane %v931_v31, 6  ;;  %v405_v3 = vperm.slane %v936_v32, 2  ;;  %v407_v5 = vperm.slane %v955_v42, 2 }
  0x64   :  { %1656 = vst [vmem:[#allocation30_spill] sm:$0xff] %v1136_v38  ;;  %v408_v6 = vperm.slane %v955_v42, 6 }
  0x65   :  { %1657 = vst [vmem:[#allocation31_spill] sm:$0xff] %v1138_v39 }
  0x66   :  { %v201_v34 = vpop.permute.xlu2 %200  ;;  %1658 = vst [vmem:[#allocation32_spill] sm:$0xff] %v1140_v40 }
  0x67   :  { %v1150_v24 = vmul.f32 %v965_v47, %v201_v34  ;;  %v1153_v25 = vmul.f32 %v967_v48, %v201_v34  ;;  %v1156_v28 = vmul.f32 %v969_v49, %v201_v34  ;;  %v1160_v40 = vmul.f32 %v971_v50, %v201_v34 }
  0x68   :  { %v1163_v39 = vmul.f32 %v973_v51, %v201_v34  ;;  %v1166_v38 = vmul.f32 %v975_v52, %v201_v34  ;;  %v1169_v47 = vmul.f32 %v977_v53, %v201_v34  ;;  %v1172_v48 = vmul.f32 %v979_v54, %v201_v34 }
  0x69   :  { %1659 = vst [vmem:[#allocation33_spill] sm:$0xff] %v1153_v25  ;;  %v1174_v25 = vperm.slane %v403_v41, 2  ;;  %v1176_v49 = vperm.slane %v404_v17, 2  ;;  %v235_v50 = vperm.slane %v1043_v59, 1  ;;  %v236_v51 = vperm.slane %v1043_v59, 5 }
  0x6a   :  { %1660 = vst [vmem:[#allocation34_spill] sm:$0xff] %v1156_v28  ;;  %v1178_v28 = vperm.slane %v405_v3, 2  ;;  %v238_v52 = vperm.slane %v1048_v63, 5  ;;  %v239_v53 = vperm.slane %v1053_v0, 1  ;;  %v241_v54 = vperm.slane %v1058_v1, 1 }
  0x6b   :  { %1661 = vst [vmem:[#allocation35_spill] sm:$0xff] %v1163_v39  ;;  %v237_v39 = vperm.slane %v1048_v63, 1  ;;  %v242_v34 = vperm.slane %v1058_v1, 5  ;;  %v1188_v41 = vperm.slane %v406_v4, 2  ;;  %v1190_v17 = vperm.slane %v407_v5, 2 }
  0x6c   :  { %1662 = vst [vmem:[#allocation36_spill] sm:$0xff] %v1169_v47  ;;  %v240_v47 = vperm.slane %v1053_v0, 5  ;;  %v1192_v3 = vperm.slane %v408_v6, 2  ;;  %v1196_v59 = vperm.slane %v410_v35, 2  ;;  %v1200_v63 = vperm.slane %v236_v51, 1 }
  0x6d   :  { %1663 = vst [vmem:[#allocation37_spill] sm:$0xff] %v1172_v48  ;;  %v1204_v48 = vperm.slane %v238_v52, 1  ;;  %v1206_v1 = vperm.slane %v239_v53, 1  ;;  %v1210_v5 = vperm.slane %v241_v54, 1  ;;  %v1212_v6 = vperm.slane %v242_v34, 1 }
  0x6e   :  { %1664 = vst [vmem:[#allocation38_spill] sm:$0xff] %v1174_v25  ;;  %v1202_v25 = vperm.slane %v237_v39, 1  ;;  %v1208_v4 = vperm.slane %v240_v47, 1  ;;  %v227_v35 = vperm.slane %v931_v31, 1  ;;  %v230_v53 = vperm.slane %v936_v32, 5 }
  0x6f   :  { %1665 = vst [vmem:[#allocation39_spill] sm:$0xff] %v1176_v49  ;;  %v1198_v49 = vperm.slane %v235_v50, 1  ;;  %v373_v0 = vpop.permute.xlu2 %372  ;;  %v229_v50 = vperm.slane %v936_v32, 1  ;;  %v231_v47 = vperm.slane %v955_v42, 1  ;;  %v232_v54 = vperm.slane %v955_v42, 5 }
  0x70   :  { %1666 = vst [vmem:[#allocation40_spill] sm:$0xff] %v1178_v28  ;;  %v1194_v28 = vperm.slane %v409_v27, 2  ;;  %v228_v27 = vperm.slane %v931_v31, 5  ;;  %v483_v39 = vmul.f32 %v1034_v56, %v373_v0  ;;  %v484_v51 = vmul.f32 %v1036_v57, %v373_v0 }
  0x71   :  { %1667 = vst [vmem:[#allocation41_spill] sm:$0xff] %v1202_v25  ;;  %v485_v52 = vmul.f32 %v1038_v58, %v373_v0  ;;  %v233_v34 = vperm.slane %v960_v43, 1  ;;  %v486_v31 = vmul.f32 %v1068_v11, %v373_v0  ;;  %v488_v56 = vmul.f32 %v1072_v9, %v373_v0 }
  0x72   :  { %1668 = vst [vmem:[#allocation42_spill] sm:$0xff] %v1204_v48  ;;  %v489_v57 = vmul.f32 %v1074_v8, %v373_v0  ;;  %v490_v32 = vmul.f32 %v1076_v14, %v373_v0  ;;  %v1232_v48 = vperm.slane %v228_v27, 1  ;;  %v1234_v42 = vperm.slane %v229_v50, 1 }
  0x73   :  { %1669 = vst [vmem:[#allocation43_spill] sm:$0xff] %v1206_v1  ;;  %v1230_v1 = vperm.slane %v227_v35, 1  ;;  %v1236_v25 = vperm.slane %v230_v53, 1  ;;  %v1240_v11 = vperm.slane %v232_v54, 1  ;;  %v1679_v54 = vld [vmem:[#allocation19_spill] sm:$0xff] }
  0x74   :  { %1670 = vst [vmem:[#allocation44_spill] sm:$0xff] %v1208_v4  ;;  %v44_v4 = vpop.permute.xlu1 %43  ;;  %v34_v58 = vpop.permute.xlu0 %33 }
  0x75   :  { %1671 = vst [vmem:[#allocation45_spill] sm:$0xff] %v1210_v5  ;;  %v487_v5 = vmul.f32 %v1070_v10, %v373_v0  ;;  %v1242_v10 = vperm.slane %v233_v34, 1  ;;  %v1245_v8 = vmul.f32 %v986_v60, %v44_v4  ;;  %v1248_v9 = vmul.f32 %v988_v61, %v44_v4  ;;  %v1680_v34 = vld [vmem:[#allocation20_spill] sm:$0xff] }
  0x76   :  { %1672 = vst [vmem:[#allocation46_spill] sm:$0xff] %v1212_v6  ;;  %v234_v6 = vperm.slane %v960_v43, 5  ;;  %v1238_v43 = vperm.slane %v231_v47, 1  ;;  %v1251_v14 = vmul.f32 %v990_v62, %v44_v4  ;;  %v163_v35 = vmul.f32 %v1010_v18, %v34_v58 }
  0x77   :  { %1674 = vst [vmem:[#allocation48_spill] sm:$0xff] %v1242_v10  ;;  %v164_v27 = vmul.f32 %v1012_v19, %v34_v58  ;;  %v165_v50 = vmul.f32 %v1014_v20, %v34_v58  ;;  %v166_v53 = vmul.f32 %v1016_v23, %v34_v58  ;;  %v167_v47 = vmul.f32 %v1021_v30, %v34_v58 }
  0x78   :  { %1673 = vst [vmem:[#allocation47_spill] sm:$0xff] %v1238_v43  ;;  %v1253_v0 = vperm.slane %v234_v6, 1  ;;  %v168_v60 = vmul.f32 %v1023_v33, %v34_v58  ;;  %v169_v61 = vmul.f32 %v1679_v54, %v34_v58  ;;  %v339_v62 = vadd.f32 %v1093_v45, %v163_v35  ;;  %v1685_v45 = vld [vmem:[#allocation16_spill] sm:$0xff] }
  0x79   :  { %1675 = vst [vmem:[#allocation49_spill] sm:$0xff] %v1245_v8  ;;  %v340_v6 = vadd.f32 %v1096_v46, %v164_v27  ;;  %v341_v18 = vadd.f32 %v1099_v55, %v165_v50  ;;  %v342_v19 = vadd.f32 %v1112_v26, %v166_v53  ;;  %v343_v20 = vadd.f32 %v1115_v29, %v167_v47  ;;  %v1687_v55 = vld [vmem:[#allocation17_spill] sm:$0xff]  ;;  %v1689_v26 = vld [vmem:[#allocation18_spill] sm:$0xff] }
  0x7a   :  { %1676 = vst [vmem:[#allocation50_spill] sm:$0xff] %v1248_v9  ;;  %v170_v9 = vmul.f32 %v1680_v34, %v34_v58  ;;  %v344_v23 = vadd.f32 %v1118_v15, %v168_v60  ;;  %v345_v30 = vadd.f32 %v1121_v2, %v169_v61  ;;  %v1683_v58 = vld [vmem:[#allocation15_spill] sm:$0xff]  ;;  %v1278_v46 = vmul.f32 %v1685_v45, %v44_v4  ;;  %v1705_v45 = vld [vmem:[#allocation34_spill] sm:$0xff] }
  0x7b   :  { %1677 = vst [vmem:[#allocation51_spill] sm:$0xff] %v1251_v14  ;;  %v1681_v14 = vld [vmem:[#allocation14_spill] sm:$0xff]  ;;  %v1275_v34 = vmul.f32 %v1683_v58, %v44_v4  ;;  %v1281_v35 = vmul.f32 %v1687_v55, %v44_v4  ;;  %v1284_v29 = vmul.f32 %v1689_v26, %v44_v4  ;;  %v1286_v15 = vadd.f32 %v483_v39, %v339_v62  ;;  %v381_v26 = vpop.permute.xlu2 %380 }
  0x7c   :  { %1678 = vst [vmem:[#allocation52_spill] sm:$0xff] %v1253_v0  ;;  %v346_v33 = vadd.f32 %v1124_v16, %v170_v9  ;;  %v1272_v54 = vmul.f32 %v1681_v14, %v44_v4  ;;  %v1288_v2 = vadd.f32 %v484_v51, %v340_v6  ;;  %v1290_v16 = vadd.f32 %v485_v52, %v341_v18  ;;  %v49_v9 = vpop.permute.xlu1 %48  ;;  %v39_v14 = vpop.permute.xlu0 %38  ;;  %v1698_v6 = vld [vmem:[#allocation32_spill] sm:$0xff]  ;;  %v1699_v18 = vld [vmem:[#allocation25_spill] sm:$0xff] }
  0x7d   :  { %1684 = vst [vmem:[#allocation20_spill] sm:$0xff] %v1275_v34  ;;  %v1292_v27 = vadd.f32 %v486_v31, %v342_v19  ;;  %v1294_v50 = vadd.f32 %v487_v5, %v343_v20  ;;  %v1296_v53 = vadd.f32 %v488_v56, %v344_v23  ;;  %v1298_v47 = vadd.f32 %v489_v57, %v345_v30  ;;  %v1696_v57 = vld [vmem:[#allocation30_spill] sm:$0xff] }
  0x7e   :  { %1682 = vst [vmem:[#allocation19_spill] sm:$0xff] %v1272_v54  ;;  %v1300_v60 = vadd.f32 %v490_v32, %v346_v33  ;;  %v1303_v4 = vmul.f32 %v1078_v13, %v49_v9  ;;  %v1306_v39 = vmul.f32 %v1080_v12, %v49_v9  ;;  %v1309_v51 = vmul.f32 %v1082_v7, %v49_v9  ;;  %v1697_v13 = vld [vmem:[#allocation31_spill] sm:$0xff]  ;;  %v1700_v7 = vld [vmem:[#allocation26_spill] sm:$0xff]  ;;  %v1704_v33 = vld [vmem:[#allocation33_spill] sm:$0xff] }
  0x7f   :  { %1686 = vst [vmem:[#allocation14_spill] sm:$0xff] %v1278_v46  ;;  %v171_v31 = vmul.f32 %v1126_v21, %v39_v14  ;;  %v172_v5 = vmul.f32 %v1128_v44, %v39_v14  ;;  %v173_v52 = vmul.f32 %v1130_v22, %v39_v14  ;;  %v174_v56 = vmul.f32 %v1132_v37, %v39_v14  ;;  %v1701_v21 = vld [vmem:[#allocation27_spill] sm:$0xff]  ;;  %v1702_v22 = vld [vmem:[#allocation28_spill] sm:$0xff]  ;;  %v1703_v37 = vld [vmem:[#allocation29_spill] sm:$0xff] }
  0x80   :  { %1688 = vst [vmem:[#allocation15_spill] sm:$0xff] %v1281_v35  ;;  %v175_v32 = vmul.f32 %v1134_v36, %v39_v14  ;;  %v176_v61 = vmul.f32 %v1696_v57, %v39_v14  ;;  %v177_v62 = vmul.f32 %v1697_v13, %v39_v14  ;;  %v178_v12 = vmul.f32 %v1698_v6, %v39_v14  ;;  %v1706_v57 = vld [vmem:[#allocation35_spill] sm:$0xff] }
  0x81   :  { %1690 = vst [vmem:[#allocation16_spill] sm:$0xff] %v1284_v29  ;;  %v1320_v19 = vmul.f32 %v1699_v18, %v49_v9  ;;  %v1323_v20 = vmul.f32 %v1700_v7, %v49_v9  ;;  %v1326_v44 = vmul.f32 %v1701_v21, %v49_v9  ;;  %v1329_v23 = vmul.f32 %v1702_v22, %v49_v9 }
  0x82   :  { %1691 = vst [vmem:[#allocation17_spill] sm:$0xff] %v1292_v27  ;;  %v1332_v36 = vmul.f32 %v1703_v37, %v49_v9  ;;  %v1335_v30 = vadd.f32 %v1150_v24, %v171_v31  ;;  %v1338_v58 = vadd.f32 %v1704_v33, %v172_v5  ;;  %v1341_v55 = vadd.f32 %v1705_v45, %v173_v52  ;;  %v1707_v9 = vld [vmem:[#allocation36_spill] sm:$0xff]  ;;  %v1708_v24 = vld [vmem:[#allocation37_spill] sm:$0xff]  ;;  %v1709_v5 = vld [vmem:[#allocation38_spill] sm:$0xff] }
  0x83   :  { %1692 = vst [vmem:[#allocation18_spill] sm:$0xff] %v1294_v50  ;;  %v1344_v14 = vadd.f32 %v1160_v40, %v174_v56  ;;  %v1347_v13 = vadd.f32 %v1706_v57, %v175_v32  ;;  %v1350_v6 = vadd.f32 %v1166_v38, %v176_v61  ;;  %v1353_v18 = vadd.f32 %v1707_v9, %v177_v62  ;;  %v1711_v52 = vld [vmem:[#allocation39_spill] sm:$0xff]  ;;  %v1713_v40 = vld [vmem:[#allocation40_spill] sm:$0xff]  ;;  %v1720_v33 = vld [vmem:[#allocation6_spill] sm:$0xff]  ;;  %v553_v54 = vpop.permute.xlu2 %552 }
  0x84   :  { %1693 = vst [vmem:[#allocation53_spill] sm:$0xff] %v1296_v53  ;;  %v1356_v31 = vadd.f32 %v1708_v24, %v178_v12  ;;  %v1359_v7 = vmul.f32 %v1709_v5, %v381_v26  ;;  %v1362_v21 = vmul.f32 %v1711_v52, %v381_v26  ;;  %v1365_v56 = vmul.f32 %v1713_v40, %v381_v26  ;;  %v1721_v57 = vld [vmem:[#allocation7_spill] sm:$0xff] }
  0x85   :  { %1694 = vst [vmem:[#allocation54_spill] sm:$0xff] %v1298_v47  ;;  %v1368_v32 = vmul.f32 %v1188_v41, %v381_v26  ;;  %v1371_v38 = vmul.f32 %v1190_v17, %v381_v26  ;;  %v1374_v61 = vmul.f32 %v1192_v3, %v381_v26  ;;  %v1377_v62 = vmul.f32 %v1194_v28, %v381_v26  ;;  %v209_v12 = vpop.permute.xlu1 %208  ;;  %v1382_v37 = vpop.permute.xlu0 %204  ;;  %v1722_v28 = vld [vmem:[#allocation41_spill] sm:$0xff]  ;;  %v1724_v52 = vld [vmem:[#allocation43_spill] sm:$0xff] }
  0x86   :  { %1695 = vst [vmem:[#allocation55_spill] sm:$0xff] %v1300_v60  ;;  %v1380_v22 = vmul.f32 %v1196_v59, %v381_v26  ;;  %v571_v45 = vperm.slane %v1720_v33, 3  ;;  %v572_v41 = vperm.slane %v1720_v33, 7  ;;  %v573_v9 = vperm.slane %v1721_v57, 3  ;;  %v1723_v26 = vld [vmem:[#allocation42_spill] sm:$0xff] }
  0x87   :  { %1710 = vst [vmem:[#allocation30_spill] sm:$0xff] %v1359_v7  ;;  %v1388_v17 = vmul.f32 %v1198_v49, %v209_v12  ;;  %v1391_v3 = vmul.f32 %v1200_v63, %v209_v12  ;;  %v1394_v24 = vmul.f32 %v1722_v28, %v209_v12  ;;  %v574_v59 = vperm.slane %v1721_v57, 7 }
  0x88   :  { %1712 = vst [vmem:[#allocation31_spill] sm:$0xff] %v1362_v21  ;;  %v1398_v5 = vmul.f32 %v1723_v26, %v209_v12  ;;  %v1401_v40 = vmul.f32 %v1724_v52, %v209_v12  ;;  %v1414_v28 = vmul.f32 %v1230_v1, %v1382_v37  ;;  %v1418_v26 = vmul.f32 %v1232_v48, %v1382_v37 }
  0x89   :  { %1714 = vst [vmem:[#allocation32_spill] sm:$0xff] %v1365_v56  ;;  %v1726_v56 = vld [vmem:[#allocation45_spill] sm:$0xff]  ;;  %v1422_v52 = vmul.f32 %v1234_v42, %v1382_v37  ;;  %v636_v7 = vperm.slane %v572_v41, 3  ;;  %v637_v1 = vperm.slane %v573_v9, 3  ;;  %v638_v35 = vperm.slane %v574_v59, 3 }
  0x8a   :  { %1715 = vst [vmem:[#allocation25_spill] sm:$0xff] %v1368_v32  ;;  %v1407_v49 = vmul.f32 %v1726_v56, %v209_v12  ;;  %v1732_v32 = vld [vmem:[#allocation9_spill] sm:$0xff]  ;;  %v395_v60 = vperm.slane %v1720_v33, 2  ;;  %v397_v41 = vperm.slane %v1721_v57, 2 }
  0x8b   :  { %1716 = vst [vmem:[#allocation26_spill] sm:$0xff] %v1371_v38  ;;  %v577_v21 = vperm.slane %v1732_v32, 3  ;;  %v668_v42 = vmul.f32 %v636_v7, %v553_v54  ;;  %v401_v7 = vperm.slane %v1732_v32, 2 }
  0x8c   :  { %1717 = vst [vmem:[#allocation27_spill] sm:$0xff] %v1374_v61 }
  0x8d   :  { %1718 = vst [vmem:[#allocation28_spill] sm:$0xff] %v1377_v62  ;;  %v1725_v62 = vld [vmem:[#allocation44_spill] sm:$0xff]  ;;  %v641_v48 = vperm.slane %v577_v21, 3 }
  0x8e   :  { %1719 = vst [vmem:[#allocation29_spill] sm:$0xff] %v1380_v22  ;;  %v1404_v38 = vmul.f32 %v1725_v62, %v209_v12  ;;  %v1727_v22 = vld [vmem:[#allocation46_spill] sm:$0xff]  ;;  %v1731_v62 = vld [vmem:[#allocation8_spill] sm:$0xff] }
  0x8f   :  { %v1410_v63 = vmul.f32 %v1727_v22, %v209_v12  ;;  %1728 = vst [vmem:[#allocation33_spill] sm:$0xff] %v1414_v28  ;;  %v575_v61 = vperm.slane %v1731_v62, 3  ;;  %v576_v56 = vperm.slane %v1731_v62, 7  ;;  %v578_v12 = vperm.slane %v1732_v32, 7 }
  0x90   :  { %1729 = vst [vmem:[#allocation34_spill] sm:$0xff] %v1418_v26  ;;  %v635_v22 = vperm.slane %v571_v45, 3  ;;  %v670_v28 = vmul.f32 %v638_v35, %v553_v54  ;;  %v673_v43 = vmul.f32 %v641_v48, %v553_v54  ;;  %v396_v45 = vperm.slane %v1720_v33, 6 }
  0x91   :  { %1730 = vst [vmem:[#allocation35_spill] sm:$0xff] %v1422_v52  ;;  %v639_v34 = vperm.slane %v575_v61, 3  ;;  %v640_v29 = vperm.slane %v576_v56, 3  ;;  %v642_v46 = vperm.slane %v578_v12, 3  ;;  %v669_v52 = vmul.f32 %v637_v1, %v553_v54 }
  0x92   :  { %v667_v26 = vmul.f32 %v635_v22, %v553_v54  ;;  %v398_v61 = vperm.slane %v1721_v57, 6  ;;  %v399_v21 = vperm.slane %v1731_v62, 2  ;;  %v400_v9 = vperm.slane %v1731_v62, 6 }
  0x93   :  { %v671_v8 = vmul.f32 %v639_v34, %v553_v54  ;;  %v672_v10 = vmul.f32 %v640_v29, %v553_v54  ;;  %v674_v0 = vmul.f32 %v642_v46, %v553_v54  ;;  %v402_v35 = vperm.slane %v1732_v32, 6  ;;  %v377_v34 = vpop.permute.xlu1 %376 }
  0x94   :  { %v459_v29 = vperm.slane %v395_v60, 2  ;;  %v460_v59 = vperm.slane %v396_v45, 2  ;;  %v461_v54 = vperm.slane %v397_v41, 2  ;;  %v462_v46 = vperm.slane %v398_v61, 2 }
  0x95   :  { %v463_v56 = vperm.slane %v399_v21, 2  ;;  %v464_v12 = vperm.slane %v400_v9, 2  ;;  %v465_v33 = vperm.slane %v401_v7, 2  ;;  %v466_v22 = vperm.slane %v402_v35, 2 }
  0x96   :  { %v491_v1 = vmul.f32 %v459_v29, %v377_v34  ;;  %v492_v57 = vmul.f32 %v460_v59, %v377_v34  ;;  %v493_v48 = vmul.f32 %v461_v54, %v377_v34  ;;  %v494_v47 = vmul.f32 %v462_v46, %v377_v34 }
  0x97   :  { %v495_v50 = vmul.f32 %v463_v56, %v377_v34  ;;  %v496_v62 = vmul.f32 %v464_v12, %v377_v34  ;;  %v497_v53 = vmul.f32 %v465_v33, %v377_v34  ;;  %v498_v27 = vmul.f32 %v466_v22, %v377_v34 }
  0x98   :  { %v523_v32 = vadd.f32 %v491_v1, %v1335_v30  ;;  %v524_v60 = vadd.f32 %v492_v57, %v1338_v58  ;;  %v525_v45 = vadd.f32 %v493_v48, %v1341_v55  ;;  %v526_v41 = vadd.f32 %v494_v47, %v1344_v14 }
  0x99   :  { %v527_v61 = vadd.f32 %v495_v50, %v1347_v13  ;;  %v528_v21 = vadd.f32 %v496_v62, %v1350_v6  ;;  %v529_v9 = vadd.f32 %v497_v53, %v1353_v18  ;;  %v530_v7 = vadd.f32 %v498_v27, %v1356_v31  ;;  %v1734_v18 = vld [vmem:[#allocation22_spill] sm:$0xff] }
  0x9a   :  { %v699_v35 = vadd.f32 %v667_v26, %v523_v32  ;;  %v700_v29 = vadd.f32 %v668_v42, %v524_v60  ;;  %v701_v59 = vadd.f32 %v669_v52, %v525_v45  ;;  %v702_v34 = vadd.f32 %v670_v28, %v526_v41 }
  0x9b   :  { %v703_v54 = vadd.f32 %v671_v8, %v527_v61  ;;  %v704_v30 = vadd.f32 %v672_v10, %v528_v21  ;;  %v705_v46 = vadd.f32 %v673_v43, %v529_v9  ;;  %v706_v58 = vadd.f32 %v674_v0, %v530_v7 }
  0x9c   :  { %v759_v56 = vrot.slane %v700_v29, 4  ;;  %v363_v47 = vadd.f32 %v1388_v17, %v1303_v4  ;;  %v364_v50 = vadd.f32 %v1391_v3, %v1306_v39  ;;  %v760_v55 = vrot.slane %v702_v34, 4  ;;  %v1736_v3 = vld [vmem:[#allocation24_spill] sm:$0xff] }
  0x9d   :  { %v761_v14 = vrot.slane %v704_v30, 4  ;;  %v365_v27 = vadd.f32 %v1394_v24, %v1309_v51  ;;  %v366_v53 = vadd.f32 %v1398_v5, %v1320_v19  ;;  %v762_v13 = vrot.slane %v706_v58, 4  ;;  %v385_v5 = vpop.permute.xlu0 %384 }
  0x9e   :  { %v776_v10 = vsel %vm771_vm0, %v699_v35, %v759_v56  ;;  %v367_v43 = vadd.f32 %v1401_v40, %v1323_v20  ;;  %v368_v8 = vadd.f32 %v1404_v38, %v1326_v44  ;;  %v777_v0 = vsel %vm771_vm0, %v701_v59, %v760_v55  ;;  %v1733_v20 = vld [vmem:[#allocation21_spill] sm:$0xff]  ;;  %v1735_v38 = vld [vmem:[#allocation23_spill] sm:$0xff] }
  0x9f   :  { %v778_v4 = vsel %vm771_vm0, %v703_v54, %v761_v14  ;;  %808 = vst [vmem:[%s1595_s2 + $0x20] sm:$0xff] %v776_v10  ;;  %v369_v39 = vadd.f32 %v1407_v49, %v1329_v23  ;;  %v370_v51 = vadd.f32 %v1410_v63, %v1332_v36  ;;  %v779_v19 = vsel %vm771_vm0, %v705_v46, %v762_v13 }
  0xa0   :  { %809 = vst [vmem:[%s1595_s2 + $0x28] sm:$0xff] %v777_v0  ;;  %v411_v44 = vperm.slane %v1733_v20, 2  ;;  %v412_v6 = vperm.slane %v1733_v20, 6  ;;  %v413_v31 = vperm.slane %v1734_v18, 2  ;;  %v414_v23 = vperm.slane %v1734_v18, 6 }
  0xa1   :  { %810 = vst [vmem:[%s1595_s2 + $0x30] sm:$0xff] %v778_v4  ;;  %v415_v36 = vperm.slane %v1735_v38, 2  ;;  %v416_v17 = vperm.slane %v1735_v38, 6  ;;  %v417_v24 = vperm.slane %v1736_v3, 2  ;;  %v418_v40 = vperm.slane %v1736_v3, 6 }
  0xa2   :  { %811 = vst [vmem:[%s1595_s2 + $0x38] sm:$0xff] %v779_v19  ;;  %v475_v49 = vperm.slane %v411_v44, 2  ;;  %v476_v63 = vperm.slane %v412_v6, 2  ;;  %v477_v28 = vperm.slane %v413_v31, 2  ;;  %v478_v26 = vperm.slane %v414_v23, 2 }
  0xa3   :  { %v479_v52 = vperm.slane %v415_v36, 2  ;;  %v480_v42 = vperm.slane %v416_v17, 2  ;;  %v481_v12 = vperm.slane %v417_v24, 2  ;;  %v482_v33 = vperm.slane %v418_v40, 2 }
  0xa4   :  { %v507_v22 = vmul.f32 %v475_v49, %v385_v5  ;;  %v508_v1 = vmul.f32 %v476_v63, %v385_v5  ;;  %v509_v57 = vmul.f32 %v477_v28, %v385_v5  ;;  %v510_v48 = vmul.f32 %v478_v26, %v385_v5  ;;  %v1737_v49 = vld [vmem:[#allocation2_spill] sm:$0xff] }
  0xa5   :  { %v511_v62 = vmul.f32 %v479_v52, %v385_v5  ;;  %v512_v32 = vmul.f32 %v480_v42, %v385_v5  ;;  %v513_v60 = vmul.f32 %v481_v12, %v385_v5  ;;  %v514_v45 = vmul.f32 %v482_v33, %v385_v5  ;;  %v1738_v42 = vld [vmem:[#allocation3_spill] sm:$0xff] }
  0xa6   :  { %v539_v41 = vadd.f32 %v507_v22, %v363_v47  ;;  %v540_v61 = vadd.f32 %v508_v1, %v364_v50  ;;  %v541_v21 = vadd.f32 %v509_v57, %v365_v27  ;;  %v542_v9 = vadd.f32 %v510_v48, %v366_v53  ;;  %v561_v50 = vpop.permute.xlu2 %560  ;;  %v1739_v57 = vld [vmem:[#allocation4_spill] sm:$0xff] }
  0xa7   :  { %v543_v7 = vadd.f32 %v511_v62, %v367_v43  ;;  %v544_v35 = vadd.f32 %v512_v32, %v368_v8  ;;  %v545_v29 = vadd.f32 %v513_v60, %v369_v39  ;;  %v546_v59 = vadd.f32 %v514_v45, %v370_v51  ;;  %v1740_v45 = vld [vmem:[#allocation5_spill] sm:$0xff] }
  0xa8   :  { %v587_v34 = vperm.slane %v1733_v20, 3  ;;  %v588_v54 = vperm.slane %v1733_v20, 7  ;;  %v589_v30 = vperm.slane %v1734_v18, 3  ;;  %v590_v46 = vperm.slane %v1734_v18, 7 }
  0xa9   :  { %v591_v58 = vperm.slane %v1735_v38, 3  ;;  %v592_v56 = vperm.slane %v1735_v38, 7  ;;  %v593_v47 = vperm.slane %v1736_v3, 3  ;;  %v594_v55 = vperm.slane %v1736_v3, 7 }
  0xaa   :  { %v651_v14 = vperm.slane %v587_v34, 3  ;;  %v652_v27 = vperm.slane %v588_v54, 3  ;;  %v653_v53 = vperm.slane %v589_v30, 3  ;;  %v654_v13 = vperm.slane %v590_v46, 3 }
  0xab   :  { %v655_v10 = vperm.slane %v591_v58, 3  ;;  %v656_v43 = vperm.slane %v592_v56, 3  ;;  %v657_v8 = vperm.slane %v593_v47, 3  ;;  %v658_v0 = vperm.slane %v594_v55, 3 }
  0xac   :  { %v683_v4 = vmul.f32 %v651_v14, %v561_v50  ;;  %v684_v39 = vmul.f32 %v652_v27, %v561_v50  ;;  %v685_v51 = vmul.f32 %v653_v53, %v561_v50  ;;  %v686_v19 = vmul.f32 %v654_v13, %v561_v50 }
  0xad   :  { %v687_v20 = vmul.f32 %v655_v10, %v561_v50  ;;  %v688_v44 = vmul.f32 %v656_v43, %v561_v50  ;;  %v689_v6 = vmul.f32 %v657_v8, %v561_v50  ;;  %v690_v18 = vmul.f32 %v658_v0, %v561_v50 }
  0xae   :  { %v715_v31 = vadd.f32 %v683_v4, %v539_v41  ;;  %v716_v23 = vadd.f32 %v684_v39, %v540_v61  ;;  %v717_v38 = vadd.f32 %v685_v51, %v541_v21  ;;  %v718_v36 = vadd.f32 %v686_v19, %v542_v9  ;;  %v549_v21 = vpop.permute.xlu1 %548  ;;  %v1741_v4 = vld [vmem:[#allocation17_spill] sm:$0xff] }
  0xaf   :  { %v719_v17 = vadd.f32 %v687_v20, %v543_v7  ;;  %v720_v3 = vadd.f32 %v688_v44, %v544_v35  ;;  %v721_v24 = vadd.f32 %v689_v6, %v545_v29  ;;  %v722_v5 = vadd.f32 %v690_v18, %v546_v59  ;;  %v1742_v51 = vld [vmem:[#allocation53_spill] sm:$0xff]  ;;  %v1743_v20 = vld [vmem:[#allocation18_spill] sm:$0xff] }
  0xb0   :  { %v767_v40 = vrot.slane %v716_v23, 4  ;;  %v563_v63 = vperm.slane %v1737_v49, 3  ;;  %v564_v28 = vperm.slane %v1737_v49, 7  ;;  %v768_v26 = vrot.slane %v718_v36, 4  ;;  %v1744_v6 = vld [vmem:[#allocation54_spill] sm:$0xff] }
  0xb1   :  { %v769_v52 = vrot.slane %v720_v3, 4  ;;  %v565_v12 = vperm.slane %v1738_v42, 3  ;;  %v566_v33 = vperm.slane %v1738_v42, 7  ;;  %v770_v22 = vrot.slane %v722_v5, 4  ;;  %v1746_v36 = vld [vmem:[#allocation10_spill] sm:$0xff]  ;;  %v1747_v3 = vld [vmem:[#allocation11_spill] sm:$0xff] }
  0xb2   :  { %v784_v1 = vsel %vm771_vm0, %v715_v31, %v767_v40  ;;  %v567_v48 = vperm.slane %v1739_v57, 3  ;;  %v568_v62 = vperm.slane %v1739_v57, 7  ;;  %v785_v32 = vsel %vm771_vm0, %v717_v38, %v768_v26  ;;  %v1745_v31 = vld [vmem:[#allocation55_spill] sm:$0xff] }
  0xb3   :  { %v786_v60 = vsel %vm771_vm0, %v719_v17, %v769_v52  ;;  %816 = vst [vmem:[%s1595_s2 + $0x60] sm:$0xff] %v784_v1  ;;  %v569_v41 = vperm.slane %v1740_v45, 3  ;;  %v570_v61 = vperm.slane %v1740_v45, 7  ;;  %v787_v9 = vsel %vm771_vm0, %v721_v24, %v770_v22  ;;  %v1749_v52 = vld [vmem:[#allocation52_spill] sm:$0xff]  ;;  %v1751_v57 = vld [vmem:[#allocation47_spill] sm:$0xff] }
  0xb4   :  { %817 = vst [vmem:[%s1595_s2 + $0x68] sm:$0xff] %v785_v32  ;;  %v627_v7 = vperm.slane %v563_v63, 3  ;;  %v628_v35 = vperm.slane %v564_v28, 3  ;;  %v629_v29 = vperm.slane %v565_v12, 3  ;;  %v630_v59 = vperm.slane %v566_v33, 3  ;;  %v1748_v63 = vld [vmem:[#allocation12_spill] sm:$0xff] }
  0xb5   :  { %818 = vst [vmem:[%s1595_s2 + $0x70] sm:$0xff] %v786_v60  ;;  %v631_v34 = vperm.slane %v567_v48, 3  ;;  %v632_v54 = vperm.slane %v568_v62, 3  ;;  %v633_v30 = vperm.slane %v569_v41, 3  ;;  %v634_v46 = vperm.slane %v570_v61, 3  ;;  %v1750_v33 = vld [vmem:[#allocation13_spill] sm:$0xff] }
  0xb6   :  { %819 = vst [vmem:[%s1595_s2 + $0x78] sm:$0xff] %v787_v9  ;;  %v659_v58 = vmul.f32 %v627_v7, %v549_v21  ;;  %v660_v56 = vmul.f32 %v628_v35, %v549_v21  ;;  %v661_v47 = vmul.f32 %v629_v29, %v549_v21  ;;  %v662_v50 = vmul.f32 %v630_v59, %v549_v21  ;;  %v1752_v62 = vld [vmem:[#allocation48_spill] sm:$0xff]  ;;  %v1754_v9 = vld [vmem:[#allocation33_spill] sm:$0xff]  ;;  %v1755_v35 = vld [vmem:[#allocation50_spill] sm:$0xff] }
  0xb7   :  { %v663_v55 = vmul.f32 %v631_v34, %v549_v21  ;;  %v664_v14 = vmul.f32 %v632_v54, %v549_v21  ;;  %v665_v27 = vmul.f32 %v633_v30, %v549_v21  ;;  %v326_v53 = vmul.f32 %v1236_v25, %v1382_v37  ;;  %v1756_v29 = vld [vmem:[#allocation34_spill] sm:$0xff]  ;;  %v557_v54 = vpop.permute.xlu1 %556  ;;  %v1757_v30 = vld [vmem:[#allocation19_spill] sm:$0xff] }
  0xb8   :  { %v328_v13 = vmul.f32 %v1240_v11, %v1382_v37  ;;  %v666_v10 = vmul.f32 %v634_v46, %v549_v21  ;;  %v692_v43 = vadd.f32 %v660_v56, %v1288_v2  ;;  %v691_v8 = vadd.f32 %v659_v58, %v1286_v15  ;;  %v1753_v21 = vld [vmem:[#allocation49_spill] sm:$0xff]  ;;  %v1758_v58 = vld [vmem:[#allocation14_spill] sm:$0xff] }
  0xb9   :  { %v693_v0 = vadd.f32 %v661_v47, %v1290_v16  ;;  %v694_v39 = vadd.f32 %v662_v50, %v1741_v4  ;;  %v696_v19 = vadd.f32 %v664_v14, %v1742_v51  ;;  %v695_v44 = vadd.f32 %v663_v55, %v1743_v20  ;;  %v1759_v55 = vld [vmem:[#allocation51_spill] sm:$0xff]  ;;  %v1764_v51 = vld [vmem:[#allocation30_spill] sm:$0xff] }
  0xba   :  { %v697_v18 = vadd.f32 %v665_v27, %v1744_v6  ;;  %v698_v25 = vadd.f32 %v666_v10, %v1745_v31  ;;  %v755_v23 = vrot.slane %v692_v43, 4  ;;  %v579_v17 = vperm.slane %v1746_v36, 3  ;;  %v1760_v14 = vld [vmem:[#allocation35_spill] sm:$0xff]  ;;  %v1761_v10 = vld [vmem:[#allocation16_spill] sm:$0xff]  ;;  %v1766_v6 = vld [vmem:[#allocation25_spill] sm:$0xff] }
  0xbb   :  { %v756_v38 = vrot.slane %v694_v39, 4  ;;  %v757_v11 = vrot.slane %v696_v19, 4  ;;  %v580_v2 = vperm.slane %v1746_v36, 7  ;;  %v581_v24 = vperm.slane %v1747_v3, 3  ;;  %v1763_v4 = vld [vmem:[#allocation15_spill] sm:$0xff] }
  0xbc   :  { %v758_v15 = vrot.slane %v698_v25, 4  ;;  %v772_v16 = vsel %vm771_vm0, %v691_v8, %v755_v23  ;;  %v582_v5 = vperm.slane %v1747_v3, 7  ;;  %v583_v28 = vperm.slane %v1748_v63, 3  ;;  %v1762_v8 = vld [vmem:[#allocation20_spill] sm:$0xff]  ;;  %v1765_v20 = vld [vmem:[#allocation31_spill] sm:$0xff] }
  0xbd   :  { %v773_v40 = vsel %vm771_vm0, %v693_v0, %v756_v38  ;;  %v774_v49 = vsel %vm771_vm0, %v695_v44, %v757_v11  ;;  %804 = vst [vmem:[%s1595_s2] sm:$0xff] %v772_v16  ;;  %v584_v26 = vperm.slane %v1748_v63, 7  ;;  %v330_v42 = vmul.f32 %v1749_v52, %v1382_v37 }
  0xbe   :  { %v775_v12 = vsel %vm771_vm0, %v697_v18, %v758_v15  ;;  %805 = vst [vmem:[%s1595_s2 + $0x8] sm:$0xff] %v773_v40  ;;  %v585_v22 = vperm.slane %v1750_v33, 3  ;;  %v586_v1 = vperm.slane %v1750_v33, 7  ;;  %v327_v48 = vmul.f32 %v1751_v57, %v1382_v37  ;;  %v1770_v40 = vld [vmem:[#allocation26_spill] sm:$0xff] }
  0xbf   :  { %v329_v32 = vmul.f32 %v1752_v62, %v1382_v37  ;;  %806 = vst [vmem:[%s1595_s2 + $0x10] sm:$0xff] %v774_v49  ;;  %v643_v60 = vperm.slane %v579_v17, 3  ;;  %v644_v45 = vperm.slane %v580_v2, 3  ;;  %v645_v41 = vperm.slane %v581_v24, 3  ;;  %v1768_v17 = vld [vmem:[#allocation29_spill] sm:$0xff]  ;;  %v1769_v24 = vld [vmem:[#allocation32_spill] sm:$0xff] }
  0xc0   :  { %807 = vst [vmem:[%s1595_s2 + $0x18] sm:$0xff] %v775_v12  ;;  %v646_v61 = vperm.slane %v582_v5, 3  ;;  %v355_v7 = vadd.f32 %v1754_v9, %v1753_v21  ;;  %v356_v59 = vadd.f32 %v1756_v29, %v1755_v35  ;;  %v647_v34 = vperm.slane %v583_v28, 3 }
  0xc1   :  { %v648_v37 = vperm.slane %v584_v26, 3  ;;  %v358_v46 = vadd.f32 %v326_v53, %v1757_v30  ;;  %v360_v56 = vadd.f32 %v328_v13, %v1758_v58  ;;  %v649_v47 = vperm.slane %v585_v22, 3  ;;  %v1767_v53 = vld [vmem:[#allocation27_spill] sm:$0xff]  ;;  %v1771_v26 = vld [vmem:[#allocation28_spill] sm:$0xff] }
  0xc2   :  { %v650_v50 = vperm.slane %v586_v1, 3  ;;  %v357_v27 = vadd.f32 %v1760_v14, %v1759_v55  ;;  %v362_v43 = vadd.f32 %v330_v42, %v1761_v10  ;;  %v359_v0 = vadd.f32 %v327_v48, %v1762_v8 }
  0xc3   :  { %v361_v39 = vadd.f32 %v329_v32, %v1763_v4  ;;  %v531_v19 = vadd.f32 %v1764_v51, %v355_v7  ;;  %v532_v44 = vadd.f32 %v1765_v20, %v356_v59  ;;  %v534_v18 = vadd.f32 %v1766_v6, %v358_v46 }
  0xc4   :  { %v536_v31 = vadd.f32 %v1767_v53, %v360_v56  ;;  %v675_v13 = vmul.f32 %v643_v60, %v557_v54  ;;  %v676_v25 = vmul.f32 %v644_v45, %v557_v54  ;;  %v677_v23 = vmul.f32 %v645_v41, %v557_v54 }
  0xc5   :  { %v678_v38 = vmul.f32 %v646_v61, %v557_v54  ;;  %v679_v11 = vmul.f32 %v647_v34, %v557_v54  ;;  %v680_v36 = vmul.f32 %v648_v37, %v557_v54  ;;  %v538_v2 = vadd.f32 %v1768_v17, %v362_v43 }
  0xc6   :  { %v681_v15 = vmul.f32 %v649_v47, %v557_v54  ;;  %v682_v16 = vmul.f32 %v650_v50, %v557_v54  ;;  %v708_v3 = vadd.f32 %v676_v25, %v532_v44  ;;  %v533_v5 = vadd.f32 %v1769_v24, %v357_v27 }
  0xc7   :  { %v535_v49 = vadd.f32 %v1770_v40, %v359_v0  ;;  %v710_v63 = vadd.f32 %v678_v38, %v534_v18  ;;  %v712_v28 = vadd.f32 %v680_v36, %v536_v31  ;;  %v537_v52 = vadd.f32 %v1771_v26, %v361_v39 }
  0xc8   :  { %v707_v42 = vadd.f32 %v675_v13, %v531_v19  ;;  %v714_v12 = vadd.f32 %v682_v16, %v538_v2  ;;  %v763_v33 = vrot.slane %v708_v3, 4  ;;  %v709_v22 = vadd.f32 %v677_v23, %v533_v5 }
  0xc9   :  { %v711_v1 = vadd.f32 %v679_v11, %v535_v49  ;;  %v764_v57 = vrot.slane %v710_v63, 4  ;;  %v765_v48 = vrot.slane %v712_v28, 4  ;;  %v713_v62 = vadd.f32 %v681_v15, %v537_v52 }
  0xca   :  { %v766_v32 = vrot.slane %v714_v12, 4  ;;  %v780_v60 = vsel %vm771_vm0, %v707_v42, %v763_v33 }
  0xcb   :  { %v781_v45 = vsel %vm771_vm0, %v709_v22, %v764_v57  ;;  %v782_v41 = vsel %vm771_vm0, %v711_v1, %v765_v48  ;;  %812 = vst [vmem:[%s1595_s2 + $0x40] sm:$0xff] %v780_v60 }
  0xcc   :  { %v783_v61 = vsel %vm771_vm0, %v713_v62, %v766_v32  ;;  %813 = vst [vmem:[%s1595_s2 + $0x48] sm:$0xff] %v781_v45 }
  0xcd   :  { %814 = vst [vmem:[%s1595_s2 + $0x50] sm:$0xff] %v782_v41 }
  0xce   :  { %815 = vst [vmem:[%s1595_s2 + $0x58] sm:$0xff] %v783_v61 }

// kernel: ta2n_forward.4
= control target key start
LH: loop header
LB: loop body
LE: loop exit
PB: predicated region body
PF: predicated region fallthrough
CT: control target
= control target key end

     0   :  { %vm29_vm0 = vcmask 130048   ;;  %vm195_vm1 = vcmask 31744   ;;  %vm251_vm2 = vcmask 1043456   ;;  %vm97_vm5 = vcmask 125952   ;;  %s434_s2 = inlined_call_operand.vmem [shape: f32[16,32], index: 2, kind: input, shape index: {}]   ;;  %s435_s0 = inlined_call_operand.vmem [shape: f32[2,4,16], index: 0, kind: input, shape index: {}]   ;;  %s436_s3 = inlined_call_operand.vmem [shape: f32[16,32], index: 3, kind: input, shape index: {}]   ;;  %s437_s1 = inlined_call_operand.vmem [shape: f32[2,4,16], index: 1, kind: input, shape index: {}]   ;;  %s438_s5 = inlined_call_operand.vmem [shape: f32[2,4,16], index: 5, kind: output, shape index: {1}]   ;;  %s439_s4 = inlined_call_operand.vmem [shape: f32[2,2,4,16], index: 4, kind: output, shape index: {0}]  }
   0x1   :  { %v22_v0 = vld [vmem:[%s434_s2 + $0x8] sm:$0xff]  ;;  %v21_v1 = vld [vmem:[%s434_s2] sm:$0xff] }
   0x2   :  { %v19_v2 = vld [vmem:[%s435_s0] sm:$0xf]  ;;  %46 = vmatpush.msra.mxu0 %v22_v0  ;;  %v20_v3 = vld [vmem:[%s435_s0 + $0x4] sm:$0xf]  ;;  %v55_v4 = vld [vmem:[%s436_s3 + $0x8] sm:$0xff] }
   0x3   :  { %25 = vst [vmem:[#allocation1] ss:$2 sm:$0xff] %v19_v2  ;;  %v54_v5 = vld [vmem:[%s436_s3] sm:$0xff]  ;;  %78 = vmatpush.msra.mxu1 %v55_v4 }
   0x4   :  { %27 = vst [vmem:[#allocation1 + $0x1] ss:$2 sm:$0xff] %v20_v3  ;;  %47 = vmatpush.msra.mxu0 %v21_v1  ;;  %v52_v6 = vld [vmem:[%s437_s1] sm:$0xf]  ;;  %v53_v7 = vld [vmem:[%s437_s1 + $0x4] sm:$0xf] }
   0x5   :  { %79 = vmatpush.msra.mxu1 %v54_v5  ;;  %s339_s1 = smov 112  }
   0xb   :  { %v28_v8 = vld.sshfl [vmem:[#allocation1] sm:$0xff pattern:$0x75316420] }
   0xc   :  { %321 = vmatmul.msk.f32.vlgmr.msra.gmra.mxu0 %vm29_vm0, %v28_v8  ;;  %58 = vst [vmem:[#allocation1] ss:$2 sm:$0xff] %v52_v6 }
   0xd   :  { %60 = vst [vmem:[#allocation1 + $0x1] ss:$2 sm:$0xff] %v53_v7 }
  0x14   :  { %v61_v9 = vld.sshfl [vmem:[#allocation1] sm:$0xff pattern:$0x75316420] }
  0x15   :  { %322 = vmatmul.msk.f32.vlgmr.msra.gmra.mxu1 %vm29_vm0, %v61_v9 }
  0x89   :  { %v49_v10 = vpop.f32.mrf.mxu0 }
  0x8a   :  { %v85_v11 = vrot.slane %v49_v10, 4  ;;  %86 = vst [vmem:[#allocation1] ss:$2 sm:$0xff] %v49_v10  ;;  %323 = vmatpush.xpose.msk.msra.mxu2 %vm29_vm0, %v49_v10 }
  0x8c   :  { %89 = vst [vmem:[#allocation1 + $0x10] ss:$2 sm:$0xff] %v85_v11 }
  0x91   :  { %v87_v12 = vld.sshfl [vmem:[#allocation1] sm:$0xff pattern:$0x75316420] }
  0x92   :  { %v81_v13 = vpop.f32.mrf.mxu1 }
  0x93   :  { %244 = vst [vmem:[#allocation1] ss:$2 sm:$0xff] %v81_v13  ;;  %324 = vmatmul.msk.f32.vlgmr.msra.gmra.mxu2 %vm29_vm0, %v81_v13  ;;  %v101_v14 = vrot.slane %v81_v13, 4  ;;  %v90_v37 = vld.sshfl [vmem:[#allocation1 + $0x10] sm:$0xff pattern:$0x75316420] }
  0x9a   :  { %v245_v15 = vld.sshfl [vmem:[#allocation1] sm:$0xff pattern:$0x75316420] }
  0x9b   :  { %274 = vst [vmem:[#allocation1] ss:$2 sm:$0xff] %v101_v14 }
  0xa2   :  { %v275_v24 = vld.sshfl [vmem:[#allocation1] sm:$0xff pattern:$0x75316420] }
 0x116   :  { %v123_v16 = vpop.f32.mrf.mxu2 }
 0x117   :  { %129 = vxpose.xlu0.b32.start.end [1/1] (short) (narrow) %v123_v16, 8  ;;  %v127_v17 = vrot.slane %v123_v16, 4 }
 0x11f   :  { %161 = vxpose.xlu0.b32.start.end [1/1] (short) (narrow) %v127_v17, 8 }
 0x18d   :  { %246 = vrot.lane.b32.xlu0 %v245_v15, %s339_s1 }
 0x1bb   :  { %v145_v18 = vpop.trf.xlu0 }
 0x1bc   :  { %v193_v19 = vmul.f32 0.25, %v145_v18 }
 0x1be   :  { %v196_v20 = vsel %vm195_vm1, %v193_v19, -inf }
 0x1bf   :  { %197 = vmax.xlane.f32.xlu1 %v196_v20 }
 0x1c3   :  { %v177_v21 = vpop.trf.xlu0 }
 0x1c4   :  { %v194_v22 = vmul.f32 0.25, %v177_v21 }
 0x1c6   :  { %v199_v23 = vsel %vm195_vm1, %v194_v22, -inf }
 0x1c7   :  { %200 = vmax.xlane.f32.xlu1 %v199_v23 }
 0x1e0   :  { %276 = vrot.lane.b32.xlu1 %v275_v24, %s339_s1 }
 0x1ff   :  { %v247_v25 = vpop.permute.xlu0 %246 }
 0x200   :  { %325 = vmatpush.msk.msra.mxu3 %vm251_vm2, %v247_v25 }
 0x232   :  { %v198_v26 = vpop.xlane.xlu1 %197 }
 0x233   :  { %v202_v27 = vsub.f32 %v193_v19, %v198_v26 }
 0x235   :  { %v204_v28 = vmul.f32 1.442695, %v202_v27 }
 0x237   :  { %331 = vpow2.f32 %v204_v28 }
 0x23a   :  { %v201_v29 = vpop.xlane.xlu1 %200 }
 0x23b   :  { %v203_v30 = vsub.f32 %v194_v22, %v201_v29 }
 0x23d   :  { %v332_v31 = vpop.eup %331  ;;  %v206_v32 = vmul.f32 1.442695, %v203_v30 }
 0x23e   :  { %v208_v33 = vsel %vm195_vm1, %v332_v31, 0.0 }
 0x23f   :  { %333 = vpow2.f32 %v206_v32  ;;  %209 = vadd.xlane.f32.xlu2 %v208_v33 }
 0x245   :  { %v334_v34 = vpop.eup %333 }
 0x246   :  { %v211_v35 = vsel %vm195_vm1, %v334_v34, 0.0 }
 0x247   :  { %212 = vadd.xlane.f32.xlu2 %v211_v35 }
 0x252   :  { %v277_v36 = vpop.permute.xlu1 %276 }
 0x253   :  { %327 = vmatpush.msk.msrb.mxu3 %vm251_vm2, %v277_v36 }
 0x25f   :  { %91 = vrot.lane.b32.xlu2 %v87_v12, %s339_s1 }
 0x267   :  { %93 = vrot.lane.b32.xlu2 %v90_v37, %s339_s1 }
 0x2b2   :  { %v210_v38 = vpop.xlane.xlu2 %209 }
 0x2b3   :  { %335 = vrcp.f32 %v210_v38  ;;  %v225_v43 = vand.u32 2147483648, %v210_v38  ;;  %v223_v45 = vand.u32 2147483647, %v210_v38  ;;  %vm219_vm4 = vweird.f32 %v210_v38 }
 0x2b5   :  { %v226_v48 = vor.u32 1.1754944e-38, %v225_v43  ;;  %vm224_vm7 = vcmp.eq.f32.partialorder %v223_v45, 8.507059e+37 }
 0x2b9   :  { %v336_v39 = vpop.eup %335 }
 0x2ba   :  { %v215_v40 = vmul.f32 %v336_v39, %v210_v38  ;;  %v213_v41 = vpop.xlane.xlu2 %212  ;;  %vm220_vm3 = vweird.f32 %v336_v39 }
 0x2bb   :  { %337 = vrcp.f32 %v213_v41  ;;  %vm221_vm6 = vmor %vm219_vm4, %vm220_vm3  ;;  %v240_v55 = vand.u32 2147483648, %v213_v41  ;;  %v238_v57 = vand.u32 2147483647, %v213_v41  ;;  %vm234_vm9 = vweird.f32 %v213_v41 }
 0x2bc   :  { %v216_v42 = vsub.f32 1.0, %v215_v40 }
 0x2bd   :  { %v241_v59 = vor.u32 1.1754944e-38, %v240_v55  ;;  %vm239_vm11 = vcmp.eq.f32.partialorder %v238_v57, 8.507059e+37 }
 0x2be   :  { %v217_v44 = vmul.f32 %v336_v39, %v216_v42 }
 0x2c0   :  { %v218_v46 = vadd.f32 %v336_v39, %v217_v44 }
 0x2c1   :  { %v338_v47 = vpop.eup %337 }
 0x2c2   :  { %v230_v49 = vmul.f32 %v338_v47, %v213_v41  ;;  %v92_v50 = vpop.permute.xlu2 %91  ;;  %v222_v51 = vsel %vm221_vm6, %v336_v39, %v218_v46  ;;  %vm235_vm8 = vweird.f32 %v338_v47 }
 0x2c3   :  { %98 = vst.msk [vmem:[%s438_s5] sm:$0xf] %vm97_vm5, %v92_v50  ;;  %v227_v52 = vsel %vm224_vm7, %v226_v48, %v222_v51  ;;  %vm236_vm10 = vmor %vm234_vm9, %vm235_vm8 }
 0x2c4   :  { %v231_v53 = vsub.f32 1.0, %v230_v49  ;;  %v228_v54 = vmul.f32 %v332_v31, %v227_v52 }
 0x2c6   :  { %v232_v56 = vmul.f32 %v338_v47, %v231_v53  ;;  %326 = vmatmul.msk.f32.vlgmr.msra.gmra.mxu3 %vm195_vm1, %v228_v54 }
 0x2c8   :  { %v233_v58 = vadd.f32 %v338_v47, %v232_v56 }
 0x2ca   :  { %v94_v60 = vpop.permute.xlu2 %93  ;;  %v237_v61 = vsel %vm236_vm10, %v338_v47, %v233_v58 }
 0x2cb   :  { %99 = vst.msk [vmem:[%s438_s5 + $0x4] sm:$0xf] %vm97_vm5, %v94_v60  ;;  %v242_v62 = vsel %vm239_vm11, %v241_v59, %v237_v61 }
 0x2cc   :  { %v243_v63 = vmul.f32 %v334_v34, %v242_v62 }
 0x2ce   :  { %328 = vmatmul.msk.f32.vlgmr.msrb.gmra.mxu3 %vm195_vm1, %v243_v63 }
 0x349   :  { %v271_v0 = vpop.f32.mrf.mxu3 }
 0x34a   :  { %v305_v1 = vrot.slane %v271_v0, 4  ;;  %309 = vst.msk [vmem:[%s439_s4] sm:$0xf] %vm97_vm5, %v271_v0 }
 0x34c   :  { %310 = vst.msk [vmem:[%s439_s4 + $0x4] sm:$0xf] %vm97_vm5, %v305_v1 }
 0x351   :  { %v300_v2 = vpop.f32.mrf.mxu3 }
 0x352   :  { %v306_v3 = vrot.slane %v300_v2, 4  ;;  %311 = vst.msk [vmem:[%s439_s4 + $0x8] sm:$0xf] %vm97_vm5, %v300_v2 }
 0x354   :  { %312 = vst.msk [vmem:[%s439_s4 + $0xc] sm:$0xf] %vm97_vm5, %v306_v3 }

// kernel: neg.2
= control target key start
LH: loop header
LB: loop body
LE: loop exit
PB: predicated region body
PF: predicated region fallthrough
CT: control target
= control target key end

     0   :  { %s40_s0 = inlined_call_operand.vmem [shape: f32[144,2], index: 0, kind: input, shape index: {}]   ;;  %s41_s1 = inlined_call_operand.vmem [shape: f32[144,2], index: 1, kind: output, shape index: {}]  }
   0x1   :  { %v2_v0 = vld [vmem:[%s40_s0] sm:$0x3]  ;;  %v16_v1 = vld [vmem:[%s40_s0 + $0x2] sm:$0x3] }
   0x2   :  { %v5_v2 = vxor.u32 2147483648, %v2_v0  ;;  %v12_v3 = vxor.u32 2147483648, %v16_v1 }
   0x4   :  { %7 = vst [vmem:[%s41_s1] sm:$0x3] %v5_v2 }
   0x5   :  { %17 = vst [vmem:[%s41_s1 + $0x2] sm:$0x3] %v12_v3 }

// kernel: ta2n_forward.5
= control target key start
LH: loop header
LB: loop body
LE: loop exit
PB: predicated region body
PF: predicated region fallthrough
CT: control target
= control target key end

     0   :  { %s1354_s0 = inlined_call_operand.vmem [shape: f32[2,2,4,64], index: 0, kind: input, shape index: {}]   ;;  %s1355_s1 = inlined_call_operand.vmem [shape: f32[2,2,4,64], index: 1, kind: input, shape index: {}]   ;;  %s1356_s2 = inlined_call_operand.vmem [shape: f32[2,4,64,16], index: 2, kind: input, shape index: {}]   ;;  %s1357_s3 = inlined_call_operand.vmem [shape: f32[2,4,64,16], index: 3, kind: input, shape index: {}]   ;;  %s1358_s4 = inlined_call_operand.vmem [shape: f32[2,4,16], index: 4, kind: input, shape index: {}]   ;;  %s1359_s5 = inlined_call_operand.vmem [shape: f32[2,2,4,16], index: 5, kind: input, shape index: {}]   ;;  %s1360_s6 = inlined_call_operand.hbm [shape: f32[2,2,4,32], index: 6, kind: output, shape index: {}]  }
   0x1   :  { %1361 = sst [smem:[#allocation5_spill]] %s1356_s2 }
   0x2   :  { %11 = vsyncpa [#allocation3], 0 }
   0x3   :  { %13 = vsyncpa [#allocation3 + $0x1], 0  ;;  %s1106_s21 = smov 0   ;;  %s1108_s22 = smov 0  }
   0x4   :  { %s1110_s23 = smov 0   ;;  %s1112_s24 = smov 0  }
   0x5   :  { %s1114_s25 = smov 0   ;;  %s1116_s26 = smov 0  }
   0x6   :  { %s1118_s27 = smov 0   ;;  %s1120_s28 = smov 0  }
   0x7 LB: > { %s870_s29 = sadd.s32 4294967295, %s1068_s28   ;;  %s871_s30 = sadd.s32 4294967294, %s1068_s28   ;;  %s1068_s28 = sphi %s1120_s28, %s19_s28   ;;  %s1064_s27 = sphi %s1118_s27, %s1371_s27   ;;  %s1060_s26 = sphi %s1116_s26, %s1370_s26   ;;  %s1056_s25 = sphi %s1114_s25, %s1369_s25   ;;  %s1052_s24 = sphi %s1112_s24, %s1368_s24   ;;  %s1048_s23 = sphi %s1110_s23, %s1367_s23   ;;  %s1044_s22 = sphi %s1108_s22, %s1366_s22   ;;  %s1040_s21 = sphi %s1106_s21, %s1365_s21  }
   0x8   : > { %s28_s7 = sadd.s32 1, %s1060_s26  ;;  %s31_s8 = sadd.s32 1, %s1064_s27 }
   0x9   : > { %p29_p0 = scmp.ge.s32.totalorder %s28_s7, 2  ;;  %p212_p1 = scmp.ne.s32.totalorder %s1048_s23, %s1044_s22 }
   0xa   : > { %p213_p2 = scmp.eq.s32.totalorder %s870_s29, 3  ;;  %p218_p5 = scmp.ne.s32.totalorder %s1044_s22, %s1040_s21 }
   0xb   : > { %s1373_s7 = smov (%p29_p0, %s28_s7), 0  ;;  %s1375_s8 = smov (!%p29_p0, %s31_s8), %s1064_s27 }
   0xc   : > { %s198_s9 = ssub.s32 %s1060_s26, %s1373_s7  ;;  %p1157_p3 = por %p213_p2, %p212_p1 }
   0xd   : > { %p33_p4 = scmp.ge.s32.totalorder %s1375_s8, 2  ;;  %p219_p6 = scmp.eq.s32.totalorder %s871_s30, 3 }
   0xe   : > { %p874_p7 = scmp.ge.s32.totalorder %s1068_s28, 1  ;;  %p293_p9 = scmp.lt.s32.totalorder %s1068_s28, 5 }
   0xf   : > { %s1377_s8 = smov (%p33_p4, %s1375_s8), 0  ;;  %p1166_p8 = por %p219_p6, %p218_p5 }
  0x10   : > { %s197_s12 = ssub.s32 %s1064_s27, %s1377_s8  ;;  %s202_s13 = sadd.s32 1, %s1048_s23 }
  0x11   : > { %s199_s14 = sor.u32 %s198_s9, %s197_s12  ;;  %p294_p10 = pnand %p874_p7, %p293_p9 }
  0x12   : > { %p200_p11 = scmp.eq.s32.totalorder %s199_s14, 0  ;;  %p356_p12 = scmp.lt.s32.totalorder (!%p294_p10), %s1056_s25, 1 }
  0x13   : > { %297 = sbr.rel (%p294_p10) target bundleno = 318 (0x13e), region = 44  ;;  %s1364_s2 = sld [smem:[#allocation5_spill]] (!%p294_p10) }
  0x14   : > { %s1175_s15 = scalar_select %p200_p11, %s1048_s23, %s202_s13  }
  0x15   : > { %p358_p13 = scmp.lt.s32.totalorder (!%p294_p10), %s1052_s24, 1 }
  0x18   : > { %s1179_s16 = scalar_select %p356_p12, %s1056_s25, 1  ;;  %vm468_vm0 = vcmask 523264   ;;  %vm676_vm1 = vcmask 1041409   ;;  %vm679_vm2 = vcmask 1042434   ;;  %vm682_vm3 = vcmask 1043459  }
  0x19   : > { %s1202_s30 = scalar_select %p358_p13, %s1052_s24, 1  ;;  %vm698_vm4 = vcmask 130048   ;;  %vm700_vm5 = vcmask 257024  }
  0x1a   : > { %s900_s17 = sshll.u32 %s1179_s16, 8  ;;  %s876_s29 = sshll.u32 %s1179_s16, 1 }
  0x1b   : > { %s1185_s20 = scalar_lea.vmem %s1364_s2, %s900_s17  ;;  %s1210_s9 = sadd.s32 %s876_s29, %s1202_s30 }
  0x1c   : > { %v417_v0 = vld [vmem:[%s1185_s20 + $0xb8] sm:$0xff]  ;;  %v416_v2 = vld [vmem:[%s1185_s20 + $0xb0] sm:$0xff]  ;;  %v415_v5 = vld [vmem:[%s1185_s20 + $0xa8] sm:$0xff]  ;;  %s901_s12 = sshll.u32 %s1202_s30, 8  ;;  %s877_s13 = sshll.u32 %s1210_s9, 2 }
  0x1d   : > { %v425_v1 = vld [vmem:[%s1185_s20 + $0xf8] sm:$0xff]  ;;  %523 = vmatpush.msra.mxu2 %v417_v0  ;;  %v424_v3 = vld [vmem:[%s1185_s20 + $0xf0] sm:$0xff]  ;;  %v423_v6 = vld [vmem:[%s1185_s20 + $0xe8] sm:$0xff]  ;;  %s1227_s18 = scalar_lea.vmem %s1357_s3, %s901_s12  ;;  %s363_s2 = scalar_lea.vmem %s1354_s0, %s877_s13 }
  0x1e   : > { %545 = vmatpush.msra.mxu3 %v425_v1  ;;  %v409_v4 = vld [vmem:[%s1185_s20 + $0x78] sm:$0xff]  ;;  %v414_v8 = vld [vmem:[%s1185_s20 + $0xa0] sm:$0xff]  ;;  %v408_v9 = vld [vmem:[%s1185_s20 + $0x70] sm:$0xff]  ;;  %s371_s12 = scalar_lea.vmem %s1355_s1, %s877_s13  ;;  %s885_s9 = sshll.u32 %s1202_s30, 1 }
  0x1f   : > { %501 = vmatpush.msra.mxu1 %v409_v4  ;;  %v401_v7 = vld [vmem:[%s1185_s20 + $0x38] sm:$0xff]  ;;  %524 = vmatpush.msra.mxu2 %v416_v2  ;;  %v422_v10 = vld [vmem:[%s1185_s20 + $0xe0] sm:$0xff]  ;;  %v400_v11 = vld [vmem:[%s1185_s20 + $0x30] sm:$0xff]  ;;  %s1286_s13 = sadd.s32 %s885_s9, %s1179_s16  ;;  %s884_s30 = sshll.u32 %s1179_s16, 2 }
  0x20   : > { %546 = vmatpush.msra.mxu3 %v424_v3  ;;  %479 = vmatpush.msra.mxu0 %v401_v7  ;;  %v407_v12 = vld [vmem:[%s1185_s20 + $0x68] sm:$0xff]  ;;  %v406_v14 = vld [vmem:[%s1185_s20 + $0x60] sm:$0xff]  ;;  %v413_v15 = vld [vmem:[%s1185_s20 + $0x98] sm:$0xff]  ;;  %s385_s19 = scalar_lea.vmem %s1358_s4, %s884_s30  ;;  %s886_s29 = sshll.u32 %s1286_s13, 2 }
  0x21   : > { %502 = vmatpush.msra.mxu1 %v408_v9  ;;  %525 = vmatpush.msra.mxu2 %v415_v5  ;;  %v399_v13 = vld [vmem:[%s1185_s20 + $0x28] sm:$0xff]  ;;  %v421_v16 = vld [vmem:[%s1185_s20 + $0xd8] sm:$0xff]  ;;  %v398_v17 = vld [vmem:[%s1185_s20 + $0x20] sm:$0xff]  ;;  %s1070_s16 = smov 16   ;;  %s353_s9 = sand.u32 1, %s1044_s22  }
  0x22   : > { %547 = vmatpush.msra.mxu3 %v423_v6  ;;  %480 = vmatpush.msra.mxu0 %v400_v11  ;;  %v405_v18 = vld [vmem:[%s1185_s20 + $0x58] sm:$0xff]  ;;  %v412_v19 = vld [vmem:[%s1185_s20 + $0x90] sm:$0xff]  ;;  %v411_v23 = vld [vmem:[%s1185_s20 + $0x88] sm:$0xff]  ;;  %s875_s30 = sshll.u32 %s353_s9, 2 }
  0x23   : > { %503 = vmatpush.msra.mxu1 %v407_v12  ;;  %526 = vmatpush.msra.mxu2 %v414_v8  ;;  %v420_v20 = vld [vmem:[%s1185_s20 + $0xd0] sm:$0xff]  ;;  %v397_v21 = vld [vmem:[%s1185_s20 + $0x18] sm:$0xff]  ;;  %v419_v24 = vld [vmem:[%s1185_s20 + $0xc8] sm:$0xff] }
  0x24   : > { %548 = vmatpush.msra.mxu3 %v422_v10  ;;  %481 = vmatpush.msra.mxu0 %v399_v13  ;;  %v404_v22 = vld [vmem:[%s1185_s20 + $0x50] sm:$0xff]  ;;  %v403_v26 = vld [vmem:[%s1185_s20 + $0x48] sm:$0xff]  ;;  %v410_v27 = vld [vmem:[%s1185_s20 + $0x80] sm:$0xff] }
  0x25   : > { %504 = vmatpush.msra.mxu1 %v406_v14  ;;  %527 = vmatpush.msra.mxu2 %v413_v15  ;;  %v396_v25 = vld [vmem:[%s1185_s20 + $0x10] sm:$0xff]  ;;  %v418_v28 = vld [vmem:[%s1185_s20 + $0xc0] sm:$0xff]  ;;  %v449_v29 = vld [vmem:[%s1227_s18 + $0xb8] sm:$0xff] }
  0x26   : > { %549 = vmatpush.msra.mxu3 %v421_v16  ;;  %482 = vmatpush.msra.mxu0 %v398_v17  ;;  %v457_v30 = vld [vmem:[%s1227_s18 + $0xf8] sm:$0xff]  ;;  %v395_v31 = vld [vmem:[%s1185_s20 + $0x8] sm:$0xff]  ;;  %v402_v32 = vld [vmem:[%s1185_s20 + $0x40] sm:$0xff] }
  0x27   : > { %505 = vmatpush.msra.mxu1 %v405_v18  ;;  %528 = vmatpush.msra.mxu2 %v412_v19  ;;  %v1242_v33 = vld [vmem:[%s363_s2] sm:$0xf]  ;;  %v448_v34 = vld [vmem:[%s1227_s18 + $0xb0] sm:$0xff]  ;;  %v441_v36 = vld [vmem:[%s1227_s18 + $0x78] sm:$0xff] }
  0x28   : > { %550 = vmatpush.msra.mxu3 %v420_v20  ;;  %483 = vmatpush.msra.mxu0 %v397_v21  ;;  %v456_v35 = vld [vmem:[%s1227_s18 + $0xf0] sm:$0xff]  ;;  %v394_v37 = vld [vmem:[%s1185_s20] sm:$0xff]  ;;  %v447_v38 = vld [vmem:[%s1227_s18 + $0xa8] sm:$0xff]  ;;  %v461_v40 = vrot.slane %v1242_v33, 2  ;;  %v462_v45 = vrot.slane %v1242_v33, 3  ;;  %v460_v54 = vrot.slane %v1242_v33, 1  ;;  %s393_s20 = scalar_lea.vmem %s1359_s5, %s886_s29 }
  0x29   : > { %506 = vmatpush.msra.mxu1 %v404_v22  ;;  %529 = vmatpush.msra.mxu2 %v411_v23  ;;  %v455_v39 = vld [vmem:[%s1227_s18 + $0xe8] sm:$0xff]  ;;  %v433_v41 = vld [vmem:[%s1227_s18 + $0x38] sm:$0xff]  ;;  %v446_v42 = vld [vmem:[%s1227_s18 + $0xa0] sm:$0xff] }
  0x2a   : > { %551 = vmatpush.msra.mxu3 %v419_v24  ;;  %484 = vmatpush.msra.mxu0 %v396_v25  ;;  %v440_v43 = vld [vmem:[%s1227_s18 + $0x70] sm:$0xff]  ;;  %v454_v44 = vld [vmem:[%s1227_s18 + $0xe0] sm:$0xff]  ;;  %v445_v47 = vld [vmem:[%s1227_s18 + $0x98] sm:$0xff] }
  0x2b   : > { %507 = vmatpush.msra.mxu1 %v403_v26  ;;  %530 = vmatpush.msra.mxu2 %v410_v27  ;;  %v432_v46 = vld [vmem:[%s1227_s18 + $0x30] sm:$0xff]  ;;  %v439_v48 = vld [vmem:[%s1227_s18 + $0x68] sm:$0xff]  ;;  %v453_v49 = vld [vmem:[%s1227_s18 + $0xd8] sm:$0xff] }
  0x2c   : > { %552 = vmatpush.msra.mxu3 %v418_v28  ;;  %485 = vmatpush.msra.mxu0 %v395_v31  ;;  %v444_v50 = vld [vmem:[%s1227_s18 + $0x90] sm:$0xff]  ;;  %v431_v51 = vld [vmem:[%s1227_s18 + $0x28] sm:$0xff]  ;;  %v438_v52 = vld [vmem:[%s1227_s18 + $0x60] sm:$0xff] }
  0x2d   : > { %611 = vmatpush.msrb.mxu2 %v449_v29  ;;  %508 = vmatpush.msra.mxu1 %v402_v32  ;;  %v452_v53 = vld [vmem:[%s1227_s18 + $0xd0] sm:$0xff]  ;;  %v463_v55 = vld [vmem:[%s371_s12] sm:$0xf]  ;;  %v443_v56 = vld [vmem:[%s1227_s18 + $0x88] sm:$0xff]  ;;  %s896_s12 = sshll.u32 %s1056_s25, 1  ;;  %s703_s25 = scalar_lea.sflag [#allocation3], %s353_s9 }
  0x2e   : > { %633 = vmatpush.msrb.mxu3 %v457_v30  ;;  %486 = vmatpush.msra.mxu0 %v394_v37  ;;  %v430_v57 = vld [vmem:[%s1227_s18 + $0x20] sm:$0xff]  ;;  %v437_v58 = vld [vmem:[%s1227_s18 + $0x58] sm:$0xff]  ;;  %v451_v59 = vld [vmem:[%s1227_s18 + $0xc8] sm:$0xff]  ;;  %v466_v62 = vrot.slane %v463_v55, 2  ;;  %v467_v1 = vrot.slane %v463_v55, 3  ;;  %v465_v6 = vrot.slane %v463_v55, 1  ;;  %s713_s13 = sadd.s32 %s1052_s24, %s896_s12 }
  0x2f   : > { %612 = vmatpush.msrb.mxu2 %v448_v34  ;;  %589 = vmatpush.msrb.mxu1 %v441_v36  ;;  %v442_v60 = vld [vmem:[%s1227_s18 + $0x80] sm:$0xff]  ;;  %v429_v61 = vld [vmem:[%s1227_s18 + $0x18] sm:$0xff]  ;;  %v436_v63 = vld [vmem:[%s1227_s18 + $0x50] sm:$0xff]  ;;  %s897_s14 = sshll.u32 %s713_s13, 2 }
  0x30   : > { %634 = vmatpush.msrb.mxu3 %v456_v35  ;;  %889 = vmatmul.msk.f32.vlgmr.msra.gmra.mxu2 %vm468_vm0, %v461_v40  ;;  %v450_v0 = vld [vmem:[%s1227_s18 + $0xc0] sm:$0xff]  ;;  %v428_v2 = vld [vmem:[%s1227_s18 + $0x10] sm:$0xff]  ;;  %v435_v3 = vld [vmem:[%s1227_s18 + $0x48] sm:$0xff]  ;;  %s715_s29 = scalar_lea.hbm %s1360_s6, %s897_s14 }
  0x31   : > { %613 = vmatpush.msrb.mxu2 %v447_v38  ;;  %567 = vmatpush.msrb.mxu0 %v433_v41  ;;  %v427_v4 = vld [vmem:[%s1227_s18 + $0x8] sm:$0xff]  ;;  %v434_v5 = vld [vmem:[%s1227_s18 + $0x40] sm:$0xff] }
  0x32   : > { %635 = vmatpush.msrb.mxu3 %v455_v39  ;;  %590 = vmatpush.msrb.mxu1 %v440_v43  ;;  %v426_v7 = vld [vmem:[%s1227_s18] sm:$0xff]  ;;  %s355_s18 = scalar_lea.vmem [#allocation2], %s875_s30  ;;  %s994_s30 = scalar_lea.hbm %s1360_s6, 16 }
  0x33   : > { %614 = vmatpush.msrb.mxu2 %v446_v42  ;;  %568 = vmatpush.msrb.mxu0 %v432_v46  ;;  %v645_v8 = vld [vmem:[%s385_s19] sm:$0xf]  ;;  %s717_s2 = sshll.u32 %s355_s18, 4  ;;  %s718_s2 = int_to_ptr.vmem [resolvable:$true] %s717_s2 }
  0x34   : > { %636 = vmatpush.msrb.mxu3 %v454_v44  ;;  %591 = vmatpush.msrb.mxu1 %v439_v48  ;;  %v648_v9 = vrot.slane %v645_v8, 2  ;;  %v647_v10 = vrot.slane %v645_v8, 1  ;;  %v649_v12 = vrot.slane %v645_v8, 3  ;;  %v658_v22 = vld [vmem:[%s393_s20] sm:$0xf]  ;;  %s719_s20 = sshll.u32 %s715_s29, 4  ;;  %s720_s20 = int_to_ptr.hbm [resolvable:$true] %s719_s20 }
  0x35   : > { %890 = vmatmul.msk.f32.vlgmr.msra.gmra.mxu3 %vm468_vm0, %v462_v45  ;;  %615 = vmatpush.msrb.mxu2 %v445_v47  ;;  %v660_v25 = vrot.slane %v658_v22, 1  ;;  %v661_v27 = vrot.slane %v658_v22, 2  ;;  %v662_v30 = vrot.slane %v658_v22, 3 }
  0x36   : > { %637 = vmatpush.msrb.mxu3 %v453_v49  ;;  %569 = vmatpush.msrb.mxu0 %v431_v51 }
  0x37   : > { %616 = vmatpush.msrb.mxu2 %v444_v50  ;;  %592 = vmatpush.msrb.mxu1 %v438_v52 }
  0x38   : > { %638 = vmatpush.msrb.mxu3 %v452_v53  ;;  %888 = vmatmul.msk.f32.vlgmr.msra.gmra.mxu1 %vm468_vm0, %v460_v54 }
  0x39   : > { %617 = vmatpush.msrb.mxu2 %v443_v56  ;;  %570 = vmatpush.msrb.mxu0 %v430_v57 }
  0x3a   : > { %593 = vmatpush.msrb.mxu1 %v437_v58  ;;  %639 = vmatpush.msrb.mxu3 %v451_v59 }
  0x3b   : > { %887 = vmatmul.msk.f32.vlgmr.msra.gmra.mxu0 %vm468_vm0, %v1242_v33  ;;  %618 = vmatpush.msrb.mxu2 %v442_v60 }
  0x3c   : > { %571 = vmatpush.msrb.mxu0 %v429_v61  ;;  %594 = vmatpush.msrb.mxu1 %v436_v63 }
  0x3d   : > { %893 = vmatmul.msk.f32.vlgmr.msrb.gmra.mxu2 %vm468_vm0, %v466_v62  ;;  %640 = vmatpush.msrb.mxu3 %v450_v0 }
  0x3e   : > { %572 = vmatpush.msrb.mxu0 %v428_v2  ;;  %894 = vmatmul.msk.f32.vlgmr.msrb.gmra.mxu3 %vm468_vm0, %v467_v1 }
  0x3f   : > { %595 = vmatpush.msrb.mxu1 %v435_v3 }
  0x40   : > { %573 = vmatpush.msrb.mxu0 %v427_v4 }
  0x41   : > { %596 = vmatpush.msrb.mxu1 %v434_v5 }
  0x42   : > { %892 = vmatmul.msk.f32.vlgmr.msrb.gmra.mxu1 %vm468_vm0, %v465_v6  ;;  %574 = vmatpush.msrb.mxu0 %v426_v7 }
  0x43   : > { %891 = vmatmul.msk.f32.vlgmr.msrb.gmra.mxu0 %vm468_vm0, %v463_v55 }
  0xb3   : > { %v532_v11 = vpop.f32.mrf.mxu2 }
  0xb4   : > { %v656_v14 = vadd.f32 %v648_v9, %v532_v11 }
  0xb5   : > { %v510_v13 = vpop.f32.mrf.mxu1 }
  0xb6   : > { %v655_v15 = vadd.f32 %v647_v10, %v510_v13  ;;  %v678_v16 = vrot.slane %v656_v14, 6 }
  0xb8   : > { %v488_v17 = vpop.f32.mrf.mxu0  ;;  %v554_v18 = vpop.f32.mrf.mxu3  ;;  %v675_v19 = vrot.slane %v655_v15, 7 }
  0xb9   : > { %v654_v20 = vadd.f32 %v645_v8, %v488_v17  ;;  %v657_v21 = vadd.f32 %v649_v12, %v554_v18 }
  0xbb   : > { %v677_v23 = vsel %vm676_vm1, %v675_v19, %v654_v20  ;;  %v681_v24 = vrot.slane %v657_v21, 5 }
  0xbc   : > { %v680_v26 = vsel %vm679_vm2, %v678_v16, %v677_v23 }
  0xbd   : > { %v683_v28 = vsel %vm682_vm3, %v681_v24, %v680_v26 }
  0xbf   : > { %v598_v29 = vpop.f32.mrf.mxu1 }
  0xc0   : > { %v668_v31 = vadd.f32 %v660_v25, %v598_v29  ;;  %v620_v32 = vpop.f32.mrf.mxu2  ;;  %v576_v33 = vpop.f32.mrf.mxu0 }
  0xc1   : > { %v669_v34 = vadd.f32 %v661_v27, %v620_v32  ;;  %v667_v35 = vadd.f32 %v658_v22, %v576_v33  ;;  %v642_v37 = vpop.f32.mrf.mxu3 }
  0xc2   : > { %v689_v36 = vrot.slane %v668_v31, 7  ;;  %v670_v39 = vadd.f32 %v662_v30, %v642_v37 }
  0xc3   : > { %v691_v38 = vrot.slane %v669_v34, 6 }
  0xc4   : > { %v690_v40 = vsel %vm676_vm1, %v689_v36, %v667_v35  ;;  %v693_v41 = vrot.slane %v670_v39, 5 }
  0xc5   : > { %v692_v42 = vsel %vm679_vm2, %v691_v38, %v690_v40 }
  0xc6   : > { %v694_v43 = vsel %vm682_vm3, %v693_v41, %v692_v42 }
  0xc7   : > { %695 = vrot.lane.b32.xlu0 %v694_v43, %s1070_s16  ;;  %s988_s16 = sshra.s32 %s720_s20, 4  ;;  %s989_s16 = int_to_ptr.hbm [resolvable:$true] %s988_s16 }
  0xc8   : > { %s990_s24 = scalar_lea.hbm %s989_s16, 4  ;;  %p995_p4 = scmp.lt.s32.totalorder %s989_s16, %s1360_s6 }
  0xc9   : > { %p991_p0 = scmp.ne.s32.totalorder %s989_s16, %s990_s24  ;;  %p996_p5 = scmp.lt.s32.totalorder %s994_s30, %s990_s24 }
  0xcb   : > { %p992_p1 = pnand %p991_p0, %p1157_p3  ;;  %p997_p6 = por %p996_p5, %p995_p4 }
  0xcd   : > { %p993_p2 = pneg %p992_p1 }
  0xcf   : > { %p998_p7 = pnand %p997_p6, %p993_p2 }
 0x139   : > { %v696_v44 = vpop.permute.xlu0 %695 }
 0x13a   : > { %v699_v45 = vsel %vm698_vm4, %v683_v28, %v696_v44 }
 0x13b   : > { %701 = vst.msk [vmem:[%s355_s18] sm:$0xf] %vm700_vm5, %v699_v45 }
 0x13c   : > { %1001 = shalt.err (!%p998_p7)
}
 0x13d   : > { %902 = dma.vmem_to_hbm [thread:$0]  (%p1157_p3), %s718_s2, 64, %s720_s20, %s703_s25  }
 0x13e PF: > { %p908_p9 = scmp.ge.s32.totalorder %s1068_s28, 2  ;;  %s731_s9 = sand.u32 1, %s1040_s21  }
 0x13f   : > { %s732_s19 = scalar_lea.sflag [#allocation3], %s731_s9 }
 0x140   : > { %p905_p10 = pnand %p908_p9, %p1166_p8 }
 0x142   : > { %p906_p11 = pneg %p905_p10 }
 0x144   : > { %1035 = dma.done.wait (%p906_p11), %s732_s19, 64  }
 0x145   : > { %1037 = vsyncadd (%p906_p11), %s732_s19, 4294967232  ;;  %s19_s28 = sadd.s32 1, %s1068_s28   ;;  %s1365_s21 = smov %s1044_s22 }
 0x146   : > { %p16_p12 = scmp.ge.s32.totalorder %s19_s28, 6   ;;  %s1366_s22 = smov %s1048_s23 }
 0x147   : > { %s1367_s23 = smov %s1175_s15  ;;  %s1368_s24 = smov %s1060_s26 }
 0x148   : > { %s1369_s25 = smov %s1064_s27  ;;  %s1370_s26 = smov %s1373_s7 }
 0x149   : > { %s1371_s27 = smov %s1377_s8  ;;  %18 = sbr.rel (!%p16_p12) target bundleno = 7 (0x7), region = 94 }
 0x14e   :  { %738 = vsyncpa [#allocation3], 1 }
 0x14f   :  { %740 = vsyncpa [#allocation3 + $0x1], 1 }

</bundles_post_ra>
